<compile_context>
chip_gen: v6e
topology: v6e:2x2x1
jax: 0.10.0
libtpu: 0.0.40
codegen_flags: <defaults>
</compile_context>

<pallas_src>
import math
import functools
import numpy as np
import jax
import jax.numpy as jnp
from jax import lax
from jax.experimental import pallas as pl
from jax.experimental.pallas import tpu as pltpu

LN_EPS = 1e-5


def _layernorm(x, gamma, beta):
    mu = jnp.mean(x, axis=-1, keepdims=True)
    var = jnp.mean((x - mu) ** 2, axis=-1, keepdims=True)
    return (x - mu) * lax.rsqrt(var + LN_EPS) * gamma + beta


def _gelu_tanh(x):
    # tanh approximation of F.gelu (erf); tanh runs on the EUP slot.
    c = math.sqrt(2.0 / math.pi)
    return 0.5 * x * (1.0 + jnp.tanh(c * (x + 0.044715 * x * x * x)))


def _block_kernel(x_ref, sin_ref, cos_ref,
                  ln1_g_ref, ln1_b_ref, ln2_g_ref, ln2_b_ref,
                  wqkv_ref, bqkv_ref,
                  wproj_ref, bproj_ref,
                  wfc_ref, bfc_ref, wfc2_ref, bfc2_ref,
                  out_ref,
                  y_ref, *, n_head):
    x = x_ref[0]                                   # (T, C) f32
    T, C = x.shape
    hs = C // n_head
    bf16 = jnp.bfloat16

    sin = sin_ref[...]                             # (T, C) f32, zeros past rotary dims
    cos = cos_ref[...]                             # (T, C) f32, ones  past rotary dims

    # ---------------- attention branch: attn(ln_1(x)) ----------------
    h = _layernorm(x, ln1_g_ref[...], ln1_b_ref[...])                        # (T, C) f32

    # ONE fused lane-dense projection: [q_scaled | k | v | q_scaled@R | k@R].
    # rotate_half (R) and the 1/sqrt(hs) scale are pre-folded into the weight columns.
    qkv = jnp.dot(h.astype(bf16), wqkv_ref[...],
                  preferred_element_type=jnp.float32) + bqkv_ref[...]        # (T, 5C) f32
    q = qkv[:, 0 * C:1 * C] * cos + qkv[:, 3 * C:4 * C] * sin                # scaled q, rotary applied
    k = qkv[:, 1 * C:2 * C] * cos + qkv[:, 4 * C:5 * C] * sin                # k, rotary applied
    v = qkv[:, 2 * C:3 * C]

    row = lax.broadcasted_iota(jnp.int32, (T, T), 0)
    col = lax.broadcasted_iota(jnp.int32, (T, T), 1)
    causal = row >= col

    # Per-head scores / softmax / P@V; each head's output lands in its lane slice of the
    # (T, C) VMEM scratch (no concat, bounded live ranges).
    for hd in range(n_head):
        sl = slice(hd * hs, (hd + 1) * hs)
        qh = q[:, sl].astype(bf16)                 # (T, hs)
        kh = k[:, sl].astype(bf16)
        vh = v[:, sl].astype(bf16)
        att = lax.dot_general(qh, kh, (((1,), (1,)), ((), ())),
                              preferred_element_type=jnp.float32)            # (T, T) f32 (scale pre-folded)
        att = jnp.where(causal, att, -1e30)
        m = jnp.max(att, axis=-1, keepdims=True)
        e = jnp.exp(att - m)                                                 # f32 (v5e-safe)
        s = jnp.sum(e, axis=-1, keepdims=True)                               # (T, 1)
        yh = jnp.dot(e.astype(bf16), vh, preferred_element_type=jnp.float32)
        # fold softmax normalization into the (T, hs) result (EUP approx reciprocal)
        y_ref[:, sl] = yh * pl.reciprocal(s, approx=True)

    # Single lane-dense output projection on the lane-assembled heads.
    attn_out = jnp.dot(y_ref[...].astype(bf16), wproj_ref[...],
                       preferred_element_type=jnp.float32) + bproj_ref[...]

    # ---------------- MLP branch: mlp(ln_2(x)) ----------------
    h2 = _layernorm(x, ln2_g_ref[...], ln2_b_ref[...])
    a = jnp.dot(h2.astype(bf16), wfc_ref[...],
                preferred_element_type=jnp.float32) + bfc_ref[...]           # (T, P) f32
    g = _gelu_tanh(a)
    mlp_out = jnp.dot(g.astype(bf16), wfc2_ref[...],
                      preferred_element_type=jnp.float32) + bfc2_ref[...]    # (T, C) f32

    # dropout p = 0.0 (attn / resid / mlp dropout) -> identity
    out_ref[0] = attn_out + mlp_out + x


def prepare_block_params(params, sin, cos, *, n_head, rotary_ndims):
    """One-time (hoisted out of the per-call path) constant preparation."""
    C = params["w_attn"].shape[0]
    hs = C // n_head
    half = rotary_ndims // 2
    T = sin.shape[0]
    scale = 1.0 / math.sqrt(hs)
    bf16 = jnp.bfloat16
    f32 = np.float32

    # Reorder the fused c_attn columns from per-head [q|k|v] interleave to
    # head-major [Q_allheads | K_allheads | V_allheads].
    w = (np.asarray(params["w_attn"], f32)
           .reshape(C, n_head, 3, hs).transpose(0, 2, 1, 3).reshape(C, 3, C))
    b = (np.asarray(params["b_attn"], f32)
           .reshape(n_head, 3, hs).transpose(1, 0, 2).reshape(3, C))
    wq, wk, wv = w[:, 0, :], w[:, 1, :], w[:, 2, :]
    bq, bk, bv = b[0], b[1], b[2]

    # Block-diagonal per-head "rotate_half" matrix over C lanes:
    # (t @ R)[:, o+i]      = -t[:, o+i+half]
    # (t @ R)[:, o+i+half] =  t[:, o+i]    for i < half (per head offset o), 0 elsewhere.
    R = np.zeros((C, C), f32)
    for hd in range(n_head):
        o = hd * hs
        for i in range(half):
            R[o + i + half, o + i] = -1.0
            R[o + i, o + i + half] = 1.0

    # Fused (C, 5C) weight: [ scale*Wq | Wk | Wv | scale*Wq@R | Wk@R ]  (+ matching bias).
    wqkv = np.concatenate([scale * wq, wk, wv, scale * (wq @ R), wk @ R], axis=1)
    bqkv = np.concatenate([scale * bq, bk, bv, scale * (bq @ R), bk @ R], axis=0)[None, :]

    # Per-head sin/cos padded to head_size (zeros / ones past rotary_ndims), tiled over
    # heads so the kernel's rotary mul/add is lane-dense (T, C).
    sin_np = np.asarray(sin, f32)
    cos_np = np.asarray(cos, f32)
    sin_h = np.concatenate([sin_np, np.zeros((T, hs - rotary_ndims), f32)], axis=1)
    cos_h = np.concatenate([cos_np, np.ones((T, hs - rotary_ndims), f32)], axis=1)

    return dict(
        n_head=n_head,
        sinC=jnp.asarray(np.tile(sin_h, (1, n_head))),
        cosC=jnp.asarray(np.tile(cos_h, (1, n_head))),
        ln1_g=jnp.asarray(params["ln1_g"], jnp.float32),
        ln1_b=jnp.asarray(params["ln1_b"], jnp.float32),
        ln2_g=jnp.asarray(params["ln2_g"], jnp.float32),
        ln2_b=jnp.asarray(params["ln2_b"], jnp.float32),
        wqkv=jnp.asarray(wqkv).astype(bf16),
        bqkv=jnp.asarray(bqkv, jnp.float32),
        wproj=jnp.asarray(params["w_proj"]).astype(bf16),
        bproj=jnp.asarray(params["b_proj"], jnp.float32),
        wfc=jnp.asarray(params["w_fc"]).astype(bf16),
        bfc=jnp.asarray(params["b_fc"], jnp.float32),
        wfc2=jnp.asarray(params["w_fc2"]).astype(bf16),
        bfc2=jnp.asarray(params["b_fc2"], jnp.float32),
    )


def _vmem_limit_bytes(T, C, P):
    """Scoped-VMEM budget from the actual footprint (single-buffered weights), clamped."""
    f32, b16 = 4, 2
    weights = (5 * C * C + C * C + C * P + P * C) * b16 + (5 * C + 2 * C + P + 4 * C) * f32
    tables = 2 * T * C * f32                       # sin / cos
    io = 2 * 2 * T * C * f32                       # x + out blocks, double-buffered
    acts = (5 * T * C + 4 * T * C + T * T + 2 * T * P + T * C) * f32
    est = 2 * (weights + tables + io + acts) + (8 << 20)   # 2x headroom + Mosaic scratch
    try:
        cap = pltpu.get_tpu_info().vmem_capacity_bytes     # v5e/v6e: 128 MiB, v7x: 64 MiB
    except Exception:
        cap = 64 << 20
    return int(min(max(est, 32 << 20), int(0.9 * cap)))


def _build_block_call(B, T, C, P, n_head, single_buffer_consts):
    def rep(shape):
        zeros = (0,) * len(shape)
        kw = {}
        if single_buffer_consts:
            # Grid-invariant operand: no need for double-buffering.
            kw["pipeline_mode"] = pl.Buffered(1)
        return pl.BlockSpec(shape, lambda b, _z=zeros: _z, **kw)

    in_specs = [
        pl.BlockSpec((1, T, C), lambda b: (b, 0, 0)),           # x
        rep((T, C)), rep((T, C)),                               # sinC, cosC
        rep((1, C)), rep((1, C)), rep((1, C)), rep((1, C)),     # ln1_g/b, ln2_g/b
        rep((C, 5 * C)), rep((1, 5 * C)),                       # wqkv, bqkv
        rep((C, C)), rep((1, C)),                               # wproj, bproj
        rep((C, P)), rep((1, P)),                               # w_fc, b_fc
        rep((P, C)), rep((1, C)),                               # w_fc2, b_fc2
    ]

    kernel = functools.partial(_block_kernel, n_head=n_head)

    return pl.pallas_call(
        kernel,
        out_shape=jax.ShapeDtypeStruct((B, T, C), jnp.float32),
        grid_spec=pltpu.PrefetchScalarGridSpec(
            num_scalar_prefetch=0,
            grid=(B,),
            in_specs=in_specs,
            out_specs=pl.BlockSpec((1, T, C), lambda b: (b, 0, 0)),
            scratch_shapes=[pltpu.VMEM((T, C), jnp.float32)],   # head-output assembly
        ),
        input_output_aliases={0: 0},                            # out reuses x's HBM buffer
        compiler_params=pltpu.CompilerParams(
            dimension_semantics=("parallel",),
            vmem_limit_bytes=_vmem_limit_bytes(T, C, P),
        ),
    )


def block_forward(x, prep, *, attn_mask=None):
    assert attn_mask is None, "only causal (attn_mask=None) attention is implemented"
    B, T, C = x.shape
    n_head = prep["n_head"]
    P = prep["wfc"].shape[1]
    operands = (x, prep["sinC"], prep["cosC"],
                prep["ln1_g"], prep["ln1_b"], prep["ln2_g"], prep["ln2_b"],
                prep["wqkv"], prep["bqkv"],
                prep["wproj"], prep["bproj"],
                prep["wfc"], prep["bfc"], prep["wfc2"], prep["bfc2"])
    try:
        out = _build_block_call(B, T, C, P, n_head, True)(*operands)
        return jax.block_until_ready(out)
    except Exception:
        # Fallback if this JAX build rejects Buffered(1) single-buffering of constants.
        out = _build_block_call(B, T, C, P, n_head, False)(*operands)
        return jax.block_until_ready(out)


def block_reference(x, sin, cos, params, *, n_head, rotary_ndims):
    """Pure-JAX f32 reference mirroring the PyTorch Block.forward (dropout=0, causal)."""
    hp = lax.Precision.HIGHEST
    B, T, C = x.shape
    hs = C // n_head

    def ln(v, g, b):
        mu = v.mean(-1, keepdims=True)
        var = ((v - mu) ** 2).mean(-1, keepdims=True)
        return (v - mu) / jnp.sqrt(var + LN_EPS) * g + b

    def rotary(t):
        t_rot, t_pass = t[..., :rotary_ndims], t[..., rotary_ndims:]
        h2 = rotary_ndims // 2
        rh = jnp.concatenate([-t_rot[..., h2:], t_rot[..., :h2]], axis=-1)
        return jnp.concatenate([t_rot * cos + rh * sin, t_pass], axis=-1)

    h = ln(x, params["ln1_g"][0], params["ln1_b"][0])
    qkv = jnp.einsum("btc,cd->btd", h, params["w_attn"], precision=hp) + params["b_attn"][0]
    qkv = qkv.reshape(B, T, n_head, 3 * hs)
    q, k, v = qkv[..., :hs], qkv[..., hs:2 * hs], qkv[..., 2 * hs:]
    q = jnp.transpose(q, (0, 2, 1, 3))
    k = jnp.transpose(k, (0, 2, 1, 3))
    v = jnp.transpose(v, (0, 2, 1, 3))
    q, k = rotary(q), rotary(k)
    att = jnp.einsum("bhqd,bhkd->bhqk", q, k, precision=hp) / math.sqrt(hs)
    mask = jnp.tril(jnp.ones((T, T), bool))
    att = jnp.where(mask, att, -jnp.inf)
    att = jax.nn.softmax(att, axis=-1)
    y = jnp.einsum("bhqk,bhkd->bhqd", att, v, precision=hp)
    y = jnp.transpose(y, (0, 2, 1, 3)).reshape(B, T, C)
    attn_out = jnp.einsum("btc,cd->btd", y, params["w_proj"], precision=hp) + params["b_proj"][0]

    h2 = ln(x, params["ln2_g"][0], params["ln2_b"][0])
    a = jnp.einsum("btc,cp->btp", h2, params["w_fc"], precision=hp) + params["b_fc"][0]
    g = jax.nn.gelu(a, approximate=False)          # PyTorch F.gelu default (erf)
    mlp_out = jnp.einsum("btp,pc->btc", g, params["w_fc2"], precision=hp) + params["b_fc2"][0]
    return attn_out + mlp_out + x


if __name__ == "__main__":
    # Small config consistent with the module: n_embd=32, n_head=4 -> head_size=8,
    # rotary_pct=0.5 -> rotary_ndims=4, n_embd_proj=4*n_embd=128, bias=True, dropout=0.
    B, T, C = 2, 8, 32
    n_head = 4
    hs = C // n_head
    rotary_pct = 0.5
    rotary_ndims = int(hs * rotary_pct)
    n_proj = 4 * C

    key = jax.random.PRNGKey(0)
    ks = jax.random.split(key, 16)

    def w(k, shape, std=0.02):
        return (std * jax.random.normal(k, shape)).astype(jnp.float32)

    params = dict(
        ln1_g=(1.0 + 0.1 * jax.random.normal(ks[0], (1, C))).astype(jnp.float32),
        ln1_b=w(ks[1], (1, C), 0.1),
        ln2_g=(1.0 + 0.1 * jax.random.normal(ks[2], (1, C))).astype(jnp.float32),
        ln2_b=w(ks[3], (1, C), 0.1),
        w_attn=w(ks[4], (C, 3 * C)),
        b_attn=w(ks[5], (1, 3 * C), 0.01),
        w_proj=w(ks[6], (C, C)),
        b_proj=w(ks[7], (1, C), 0.01),
        w_fc=w(ks[8], (C, n_proj)),
        b_fc=w(ks[9], (1, n_proj), 0.01),
        w_fc2=w(ks[10], (n_proj, C)),
        b_fc2=w(ks[11], (1, C), 0.01),
    )

    x = jax.random.normal(ks[12], (B, T, C), jnp.float32)

    # NeoX-style rotary tables for the partial rotary dims: shape (T, rotary_ndims)
    pos = jnp.arange(T, dtype=jnp.float32)
    inv_freq = 1.0 / (10000.0 ** (jnp.arange(0, rotary_ndims, 2, dtype=jnp.float32) / rotary_ndims))
    freqs = jnp.einsum("t,f->tf", pos, inv_freq)
    emb = jnp.concatenate([freqs, freqs], axis=-1)
    sin, cos = jnp.sin(emb), jnp.cos(emb)

    # Compute the reference BEFORE the kernel: the kernel output aliases x's buffer.
    ref = jax.block_until_ready(
        block_reference(x, sin, cos, params, n_head=n_head, rotary_ndims=rotary_ndims))

    # One-time constant prep (hoisted out of the per-call path), then the kernel call.
    prep = prepare_block_params(params, sin, cos, n_head=n_head, rotary_ndims=rotary_ndims)
    out = block_forward(x, prep, attn_mask=None)
    out = jax.block_until_ready(out)

    # bf16 MXU operands + tanh-GELU + approx reciprocal -> bf16-level tolerance.
    np.testing.assert_allclose(np.asarray(out), np.asarray(ref), rtol=1e-2, atol=1e-2)
    print("KERNEL_OK")
</pallas_src>

<mosaic_0001>
module attributes {stable_mosaic.version = 11 : i64} {
  func.func @_block_kernel(%arg0: i32, %arg1: memref<1x8x32xf32, #tpu.memory_space<vmem>>, %arg2: memref<8x32xf32, #tpu.memory_space<vmem>>, %arg3: memref<8x32xf32, #tpu.memory_space<vmem>>, %arg4: memref<1x32xf32, #tpu.memory_space<vmem>>, %arg5: memref<1x32xf32, #tpu.memory_space<vmem>>, %arg6: memref<1x32xf32, #tpu.memory_space<vmem>>, %arg7: memref<1x32xf32, #tpu.memory_space<vmem>>, %arg8: memref<32x160xbf16, #tpu.memory_space<vmem>>, %arg9: memref<1x160xf32, #tpu.memory_space<vmem>>, %arg10: memref<32x32xbf16, #tpu.memory_space<vmem>>, %arg11: memref<1x32xf32, #tpu.memory_space<vmem>>, %arg12: memref<32x128xbf16, #tpu.memory_space<vmem>>, %arg13: memref<1x128xf32, #tpu.memory_space<vmem>>, %arg14: memref<128x32xbf16, #tpu.memory_space<vmem>>, %arg15: memref<1x32xf32, #tpu.memory_space<vmem>>, %arg16: memref<1x8x32xf32, #tpu.memory_space<vmem>>, %arg17: memref<8x32xf32, #tpu.memory_space<vmem>>) attributes {dimension_semantics = [#tpu.dimension_semantics<parallel>], iteration_bounds = array<i64: 2>, scalar_prefetch = 0 : i64, scratch_operands = 1 : i64, tpu.core_type = #tpu.core_type<tc>, window_params = [{transform_indices = @transform_0, window_bounds = array<i64: 1, 8, 32>}, {pipeline_mode = #tpu.pipeline_mode<synchronous>, transform_indices = @transform_1, window_bounds = array<i64: 8, 32>}, {pipeline_mode = #tpu.pipeline_mode<synchronous>, transform_indices = @transform_2, window_bounds = array<i64: 8, 32>}, {pipeline_mode = #tpu.pipeline_mode<synchronous>, transform_indices = @transform_3, window_bounds = array<i64: 1, 32>}, {pipeline_mode = #tpu.pipeline_mode<synchronous>, transform_indices = @transform_4, window_bounds = array<i64: 1, 32>}, {pipeline_mode = #tpu.pipeline_mode<synchronous>, transform_indices = @transform_5, window_bounds = array<i64: 1, 32>}, {pipeline_mode = #tpu.pipeline_mode<synchronous>, transform_indices = @transform_6, window_bounds = array<i64: 1, 32>}, {pipeline_mode = #tpu.pipeline_mode<synchronous>, transform_indices = @transform_7, window_bounds = array<i64: 32, 160>}, {pipeline_mode = #tpu.pipeline_mode<synchronous>, transform_indices = @transform_8, window_bounds = array<i64: 1, 160>}, {pipeline_mode = #tpu.pipeline_mode<synchronous>, transform_indices = @transform_9, window_bounds = array<i64: 32, 32>}, {pipeline_mode = #tpu.pipeline_mode<synchronous>, transform_indices = @transform_10, window_bounds = array<i64: 1, 32>}, {pipeline_mode = #tpu.pipeline_mode<synchronous>, transform_indices = @transform_11, window_bounds = array<i64: 32, 128>}, {pipeline_mode = #tpu.pipeline_mode<synchronous>, transform_indices = @transform_12, window_bounds = array<i64: 1, 128>}, {pipeline_mode = #tpu.pipeline_mode<synchronous>, transform_indices = @transform_13, window_bounds = array<i64: 128, 32>}, {pipeline_mode = #tpu.pipeline_mode<synchronous>, transform_indices = @transform_14, window_bounds = array<i64: 1, 32>}, {transform_indices = @transform_15, window_bounds = array<i64: 1, 8, 32>}]} {
    %c0 = arith.constant 0 : index
    %c0_0 = arith.constant 0 : index
    %c0_1 = arith.constant 0 : index
    %0 = vector.load %arg1[%c0, %c0_0, %c0_1] : memref<1x8x32xf32, #tpu.memory_space<vmem>>, vector<1x8x32xf32>
    %1 = vector.shape_cast %0 : vector<1x8x32xf32> to vector<8x32xf32>
    %c0_2 = arith.constant 0 : index
    %c0_3 = arith.constant 0 : index
    %2 = vector.load %arg2[%c0_2, %c0_3] : memref<8x32xf32, #tpu.memory_space<vmem>>, vector<8x32xf32>
    %c0_4 = arith.constant 0 : index
    %c0_5 = arith.constant 0 : index
    %3 = vector.load %arg3[%c0_4, %c0_5] : memref<8x32xf32, #tpu.memory_space<vmem>>, vector<8x32xf32>
    %c0_6 = arith.constant 0 : index
    %c0_7 = arith.constant 0 : index
    %4 = vector.load %arg4[%c0_6, %c0_7] : memref<1x32xf32, #tpu.memory_space<vmem>>, vector<1x32xf32>
    %c0_8 = arith.constant 0 : index
    %c0_9 = arith.constant 0 : index
    %5 = vector.load %arg5[%c0_8, %c0_9] : memref<1x32xf32, #tpu.memory_space<vmem>>, vector<1x32xf32>
    %cst = arith.constant dense<0.000000e+00> : vector<8xf32>
    %6 = vector.multi_reduction <add>, %1, %cst [1] : vector<8x32xf32> to vector<8xf32>
    %7 = vector.shape_cast %6 : vector<8xf32> to vector<8x1xf32>
    %cst_10 = arith.constant 3.200000e+01 : f32
    %8 = vector.broadcast %cst_10 : f32 to vector<8x1xf32>
    %9 = arith.divf %7, %8 : vector<8x1xf32>
    %10 = vector.broadcast %9 : vector<8x1xf32> to vector<8x32xf32>
    %11 = arith.subf %1, %10 : vector<8x32xf32>
    %12 = arith.mulf %11, %11 : vector<8x32xf32>
    %cst_11 = arith.constant dense<0.000000e+00> : vector<8xf32>
    %13 = vector.multi_reduction <add>, %12, %cst_11 [1] : vector<8x32xf32> to vector<8xf32>
    %14 = vector.shape_cast %13 : vector<8xf32> to vector<8x1xf32>
    %cst_12 = arith.constant 3.200000e+01 : f32
    %15 = vector.broadcast %cst_12 : f32 to vector<8x1xf32>
    %16 = arith.divf %14, %15 : vector<8x1xf32>
    %17 = vector.broadcast %9 : vector<8x1xf32> to vector<8x32xf32>
    %18 = arith.subf %1, %17 : vector<8x32xf32>
    %cst_13 = arith.constant 9.99999974E-6 : f32
    %19 = vector.broadcast %cst_13 : f32 to vector<8x1xf32>
    %20 = arith.addf %16, %19 : vector<8x1xf32>
    %21 = math.rsqrt %20 : vector<8x1xf32>
    %22 = vector.broadcast %21 : vector<8x1xf32> to vector<8x32xf32>
    %23 = arith.mulf %18, %22 : vector<8x32xf32>
    %24 = vector.broadcast %4 : vector<1x32xf32> to vector<8x32xf32>
    %25 = arith.mulf %23, %24 : vector<8x32xf32>
    %26 = vector.broadcast %5 : vector<1x32xf32> to vector<8x32xf32>
    %27 = arith.addf %25, %26 : vector<8x32xf32>
    %28 = arith.truncf %27 : vector<8x32xf32> to vector<8x32xbf16>
    %c0_14 = arith.constant 0 : index
    %c0_15 = arith.constant 0 : index
    %29 = vector.load %arg8[%c0_14, %c0_15] : memref<32x160xbf16, #tpu.memory_space<vmem>>, vector<32x160xbf16>
    %cst_16 = arith.constant dense<0.000000e+00> : vector<8x160xf32>
    %30 = tpu.matmul %28, %29, %cst_16 {dimension_numbers = #tpu.dot_dimension_numbers<[1], [0], [0], [1], [0, 0, 1, 1], [], []>} : vector<8x32xbf16>, vector<32x160xbf16>, vector<8x160xf32> -> vector<8x160xf32>
    %c0_17 = arith.constant 0 : index
    %c0_18 = arith.constant 0 : index
    %31 = vector.load %arg9[%c0_17, %c0_18] : memref<1x160xf32, #tpu.memory_space<vmem>>, vector<1x160xf32>
    %32 = vector.broadcast %31 : vector<1x160xf32> to vector<8x160xf32>
    %33 = arith.addf %30, %32 : vector<8x160xf32>
    %34 = vector.extract_strided_slice %33 {offsets = [0, 0], sizes = [8, 32], strides = [1, 1]} : vector<8x160xf32> to vector<8x32xf32>
    %35 = arith.mulf %34, %3 : vector<8x32xf32>
    %36 = vector.extract_strided_slice %33 {offsets = [0, 96], sizes = [8, 32], strides = [1, 1]} : vector<8x160xf32> to vector<8x32xf32>
    %37 = arith.mulf %36, %2 : vector<8x32xf32>
    %38 = arith.addf %35, %37 : vector<8x32xf32>
    %39 = vector.extract_strided_slice %33 {offsets = [0, 32], sizes = [8, 32], strides = [1, 1]} : vector<8x160xf32> to vector<8x32xf32>
    %40 = arith.mulf %39, %3 : vector<8x32xf32>
    %41 = vector.extract_strided_slice %33 {offsets = [0, 128], sizes = [8, 32], strides = [1, 1]} : vector<8x160xf32> to vector<8x32xf32>
    %42 = arith.mulf %41, %2 : vector<8x32xf32>
    %43 = arith.addf %40, %42 : vector<8x32xf32>
    %44 = vector.extract_strided_slice %33 {offsets = [0, 64], sizes = [8, 32], strides = [1, 1]} : vector<8x160xf32> to vector<8x32xf32>
    %45 = tpu.iota {dimensions = array<i32: 0>} : vector<8x8xi32>
    %46 = tpu.iota {dimensions = array<i32: 1>} : vector<8x8xi32>
    %47 = arith.cmpi sge, %45, %46 : vector<8x8xi32>
    %48 = vector.extract_strided_slice %38 {offsets = [0, 0], sizes = [8, 8], strides = [1, 1]} : vector<8x32xf32> to vector<8x8xf32>
    %49 = arith.truncf %48 : vector<8x8xf32> to vector<8x8xbf16>
    %50 = vector.extract_strided_slice %43 {offsets = [0, 0], sizes = [8, 8], strides = [1, 1]} : vector<8x32xf32> to vector<8x8xf32>
    %51 = arith.truncf %50 : vector<8x8xf32> to vector<8x8xbf16>
    %52 = vector.extract_strided_slice %44 {offsets = [0, 0], sizes = [8, 8], strides = [1, 1]} : vector<8x32xf32> to vector<8x8xf32>
    %53 = arith.truncf %52 : vector<8x8xf32> to vector<8x8xbf16>
    %cst_19 = arith.constant dense<0.000000e+00> : vector<8x8xf32>
    %54 = tpu.matmul %49, %51, %cst_19 {dimension_numbers = #tpu.dot_dimension_numbers<[1], [1], [0], [0], [0, 0, 1, 0], [], []>} : vector<8x8xbf16>, vector<8x8xbf16>, vector<8x8xf32> -> vector<8x8xf32>
    %cst_20 = arith.constant -1.000000e+30 : f32
    %55 = vector.broadcast %cst_20 : f32 to vector<8x8xf32>
    %56 = arith.select %47, %54, %55 : vector<8x8xi1>, vector<8x8xf32>
    %cst_21 = arith.constant dense<0xFF800000> : vector<8xf32>
    %57 = vector.multi_reduction <maximumf>, %56, %cst_21 [1] : vector<8x8xf32> to vector<8xf32>
    %58 = vector.shape_cast %57 : vector<8xf32> to vector<8x1xf32>
    %59 = vector.broadcast %58 : vector<8x1xf32> to vector<8x8xf32>
    %60 = arith.subf %56, %59 : vector<8x8xf32>
    %61 = math.exp %60 : vector<8x8xf32>
    %cst_22 = arith.constant dense<0.000000e+00> : vector<8xf32>
    %62 = vector.multi_reduction <add>, %61, %cst_22 [1] : vector<8x8xf32> to vector<8xf32>
    %63 = vector.shape_cast %62 : vector<8xf32> to vector<8x1xf32>
    %64 = arith.truncf %61 : vector<8x8xf32> to vector<8x8xbf16>
    %cst_23 = arith.constant dense<0.000000e+00> : vector<8x8xf32>
    %65 = tpu.matmul %64, %53, %cst_23 {dimension_numbers = #tpu.dot_dimension_numbers<[1], [0], [0], [1], [0, 0, 1, 1], [], []>} : vector<8x8xbf16>, vector<8x8xbf16>, vector<8x8xf32> -> vector<8x8xf32>
    %66 = tpu.reciprocal %63 {approx = true} : vector<8x1xf32> -> vector<8x1xf32>
    %67 = vector.broadcast %66 : vector<8x1xf32> to vector<8x8xf32>
    %68 = arith.mulf %65, %67 : vector<8x8xf32>
    %c0_24 = arith.constant 0 : index
    %c0_25 = arith.constant 0 : index
    %69 = vector.load %arg17[%c0_24, %c0_25] : memref<8x32xf32, #tpu.memory_space<vmem>>, vector<8x8xf32>
    tpu.vector_store %arg17[%c0_24, %c0_25], %68 {strides = array<i32>} : memref<8x32xf32, #tpu.memory_space<vmem>>, vector<8x8xf32>,
    %70 = vector.extract_strided_slice %38 {offsets = [0, 8], sizes = [8, 8], strides = [1, 1]} : vector<8x32xf32> to vector<8x8xf32>
    %71 = arith.truncf %70 : vector<8x8xf32> to vector<8x8xbf16>
    %72 = vector.extract_strided_slice %43 {offsets = [0, 8], sizes = [8, 8], strides = [1, 1]} : vector<8x32xf32> to vector<8x8xf32>
    %73 = arith.truncf %72 : vector<8x8xf32> to vector<8x8xbf16>
    %74 = vector.extract_strided_slice %44 {offsets = [0, 8], sizes = [8, 8], strides = [1, 1]} : vector<8x32xf32> to vector<8x8xf32>
    %75 = arith.truncf %74 : vector<8x8xf32> to vector<8x8xbf16>
    %cst_26 = arith.constant dense<0.000000e+00> : vector<8x8xf32>
    %76 = tpu.matmul %71, %73, %cst_26 {dimension_numbers = #tpu.dot_dimension_numbers<[1], [1], [0], [0], [0, 0, 1, 0], [], []>} : vector<8x8xbf16>, vector<8x8xbf16>, vector<8x8xf32> -> vector<8x8xf32>
    %cst_27 = arith.constant -1.000000e+30 : f32
    %77 = vector.broadcast %cst_27 : f32 to vector<8x8xf32>
    %78 = arith.select %47, %76, %77 : vector<8x8xi1>, vector<8x8xf32>
    %cst_28 = arith.constant dense<0xFF800000> : vector<8xf32>
    %79 = vector.multi_reduction <maximumf>, %78, %cst_28 [1] : vector<8x8xf32> to vector<8xf32>
    %80 = vector.shape_cast %79 : vector<8xf32> to vector<8x1xf32>
    %81 = vector.broadcast %80 : vector<8x1xf32> to vector<8x8xf32>
    %82 = arith.subf %78, %81 : vector<8x8xf32>
    %83 = math.exp %82 : vector<8x8xf32>
    %cst_29 = arith.constant dense<0.000000e+00> : vector<8xf32>
    %84 = vector.multi_reduction <add>, %83, %cst_29 [1] : vector<8x8xf32> to vector<8xf32>
    %85 = vector.shape_cast %84 : vector<8xf32> to vector<8x1xf32>
    %86 = arith.truncf %83 : vector<8x8xf32> to vector<8x8xbf16>
    %cst_30 = arith.constant dense<0.000000e+00> : vector<8x8xf32>
    %87 = tpu.matmul %86, %75, %cst_30 {dimension_numbers = #tpu.dot_dimension_numbers<[1], [0], [0], [1], [0, 0, 1, 1], [], []>} : vector<8x8xbf16>, vector<8x8xbf16>, vector<8x8xf32> -> vector<8x8xf32>
    %88 = tpu.reciprocal %85 {approx = true} : vector<8x1xf32> -> vector<8x1xf32>
    %89 = vector.broadcast %88 : vector<8x1xf32> to vector<8x8xf32>
    %90 = arith.mulf %87, %89 : vector<8x8xf32>
    %c0_31 = arith.constant 0 : index
    %c8 = arith.constant 8 : index
    %91 = vector.load %arg17[%c0_31, %c8] : memref<8x32xf32, #tpu.memory_space<vmem>>, vector<8x8xf32>
    tpu.vector_store %arg17[%c0_31, %c8], %90 {strides = array<i32>} : memref<8x32xf32, #tpu.memory_space<vmem>>, vector<8x8xf32>,
    %92 = vector.extract_strided_slice %38 {offsets = [0, 16], sizes = [8, 8], strides = [1, 1]} : vector<8x32xf32> to vector<8x8xf32>
    %93 = arith.truncf %92 : vector<8x8xf32> to vector<8x8xbf16>
    %94 = vector.extract_strided_slice %43 {offsets = [0, 16], sizes = [8, 8], strides = [1, 1]} : vector<8x32xf32> to vector<8x8xf32>
    %95 = arith.truncf %94 : vector<8x8xf32> to vector<8x8xbf16>
    %96 = vector.extract_strided_slice %44 {offsets = [0, 16], sizes = [8, 8], strides = [1, 1]} : vector<8x32xf32> to vector<8x8xf32>
    %97 = arith.truncf %96 : vector<8x8xf32> to vector<8x8xbf16>
    %cst_32 = arith.constant dense<0.000000e+00> : vector<8x8xf32>
    %98 = tpu.matmul %93, %95, %cst_32 {dimension_numbers = #tpu.dot_dimension_numbers<[1], [1], [0], [0], [0, 0, 1, 0], [], []>} : vector<8x8xbf16>, vector<8x8xbf16>, vector<8x8xf32> -> vector<8x8xf32>
    %cst_33 = arith.constant -1.000000e+30 : f32
    %99 = vector.broadcast %cst_33 : f32 to vector<8x8xf32>
    %100 = arith.select %47, %98, %99 : vector<8x8xi1>, vector<8x8xf32>
    %cst_34 = arith.constant dense<0xFF800000> : vector<8xf32>
    %101 = vector.multi_reduction <maximumf>, %100, %cst_34 [1] : vector<8x8xf32> to vector<8xf32>
    %102 = vector.shape_cast %101 : vector<8xf32> to vector<8x1xf32>
    %103 = vector.broadcast %102 : vector<8x1xf32> to vector<8x8xf32>
    %104 = arith.subf %100, %103 : vector<8x8xf32>
    %105 = math.exp %104 : vector<8x8xf32>
    %cst_35 = arith.constant dense<0.000000e+00> : vector<8xf32>
    %106 = vector.multi_reduction <add>, %105, %cst_35 [1] : vector<8x8xf32> to vector<8xf32>
    %107 = vector.shape_cast %106 : vector<8xf32> to vector<8x1xf32>
    %108 = arith.truncf %105 : vector<8x8xf32> to vector<8x8xbf16>
    %cst_36 = arith.constant dense<0.000000e+00> : vector<8x8xf32>
    %109 = tpu.matmul %108, %97, %cst_36 {dimension_numbers = #tpu.dot_dimension_numbers<[1], [0], [0], [1], [0, 0, 1, 1], [], []>} : vector<8x8xbf16>, vector<8x8xbf16>, vector<8x8xf32> -> vector<8x8xf32>
    %110 = tpu.reciprocal %107 {approx = true} : vector<8x1xf32> -> vector<8x1xf32>
    %111 = vector.broadcast %110 : vector<8x1xf32> to vector<8x8xf32>
    %112 = arith.mulf %109, %111 : vector<8x8xf32>
    %c0_37 = arith.constant 0 : index
    %c16 = arith.constant 16 : index
    %113 = vector.load %arg17[%c0_37, %c16] : memref<8x32xf32, #tpu.memory_space<vmem>>, vector<8x8xf32>
    tpu.vector_store %arg17[%c0_37, %c16], %112 {strides = array<i32>} : memref<8x32xf32, #tpu.memory_space<vmem>>, vector<8x8xf32>,
    %114 = vector.extract_strided_slice %38 {offsets = [0, 24], sizes = [8, 8], strides = [1, 1]} : vector<8x32xf32> to vector<8x8xf32>
    %115 = arith.truncf %114 : vector<8x8xf32> to vector<8x8xbf16>
    %116 = vector.extract_strided_slice %43 {offsets = [0, 24], sizes = [8, 8], strides = [1, 1]} : vector<8x32xf32> to vector<8x8xf32>
    %117 = arith.truncf %116 : vector<8x8xf32> to vector<8x8xbf16>
    %118 = vector.extract_strided_slice %44 {offsets = [0, 24], sizes = [8, 8], strides = [1, 1]} : vector<8x32xf32> to vector<8x8xf32>
    %119 = arith.truncf %118 : vector<8x8xf32> to vector<8x8xbf16>
    %cst_38 = arith.constant dense<0.000000e+00> : vector<8x8xf32>
    %120 = tpu.matmul %115, %117, %cst_38 {dimension_numbers = #tpu.dot_dimension_numbers<[1], [1], [0], [0], [0, 0, 1, 0], [], []>} : vector<8x8xbf16>, vector<8x8xbf16>, vector<8x8xf32> -> vector<8x8xf32>
    %cst_39 = arith.constant -1.000000e+30 : f32
    %121 = vector.broadcast %cst_39 : f32 to vector<8x8xf32>
    %122 = arith.select %47, %120, %121 : vector<8x8xi1>, vector<8x8xf32>
    %cst_40 = arith.constant dense<0xFF800000> : vector<8xf32>
    %123 = vector.multi_reduction <maximumf>, %122, %cst_40 [1] : vector<8x8xf32> to vector<8xf32>
    %124 = vector.shape_cast %123 : vector<8xf32> to vector<8x1xf32>
    %125 = vector.broadcast %124 : vector<8x1xf32> to vector<8x8xf32>
    %126 = arith.subf %122, %125 : vector<8x8xf32>
    %127 = math.exp %126 : vector<8x8xf32>
    %cst_41 = arith.constant dense<0.000000e+00> : vector<8xf32>
    %128 = vector.multi_reduction <add>, %127, %cst_41 [1] : vector<8x8xf32> to vector<8xf32>
    %129 = vector.shape_cast %128 : vector<8xf32> to vector<8x1xf32>
    %130 = arith.truncf %127 : vector<8x8xf32> to vector<8x8xbf16>
    %cst_42 = arith.constant dense<0.000000e+00> : vector<8x8xf32>
    %131 = tpu.matmul %130, %119, %cst_42 {dimension_numbers = #tpu.dot_dimension_numbers<[1], [0], [0], [1], [0, 0, 1, 1], [], []>} : vector<8x8xbf16>, vector<8x8xbf16>, vector<8x8xf32> -> vector<8x8xf32>
    %132 = tpu.reciprocal %129 {approx = true} : vector<8x1xf32> -> vector<8x1xf32>
    %133 = vector.broadcast %132 : vector<8x1xf32> to vector<8x8xf32>
    %134 = arith.mulf %131, %133 : vector<8x8xf32>
    %c0_43 = arith.constant 0 : index
    %c24 = arith.constant 24 : index
    %135 = vector.load %arg17[%c0_43, %c24] : memref<8x32xf32, #tpu.memory_space<vmem>>, vector<8x8xf32>
    tpu.vector_store %arg17[%c0_43, %c24], %134 {strides = array<i32>} : memref<8x32xf32, #tpu.memory_space<vmem>>, vector<8x8xf32>,
    %c0_44 = arith.constant 0 : index
    %c0_45 = arith.constant 0 : index
    %136 = vector.load %arg17[%c0_44, %c0_45] : memref<8x32xf32, #tpu.memory_space<vmem>>, vector<8x32xf32>
    %137 = arith.truncf %136 : vector<8x32xf32> to vector<8x32xbf16>
    %c0_46 = arith.constant 0 : index
    %c0_47 = arith.constant 0 : index
    %138 = vector.load %arg10[%c0_46, %c0_47] : memref<32x32xbf16, #tpu.memory_space<vmem>>, vector<32x32xbf16>
    %cst_48 = arith.constant dense<0.000000e+00> : vector<8x32xf32>
    %139 = tpu.matmul %137, %138, %cst_48 {dimension_numbers = #tpu.dot_dimension_numbers<[1], [0], [0], [1], [0, 0, 1, 1], [], []>} : vector<8x32xbf16>, vector<32x32xbf16>, vector<8x32xf32> -> vector<8x32xf32>
    %c0_49 = arith.constant 0 : index
    %c0_50 = arith.constant 0 : index
    %140 = vector.load %arg11[%c0_49, %c0_50] : memref<1x32xf32, #tpu.memory_space<vmem>>, vector<1x32xf32>
    %141 = vector.broadcast %140 : vector<1x32xf32> to vector<8x32xf32>
    %142 = arith.addf %139, %141 : vector<8x32xf32>
    %c0_51 = arith.constant 0 : index
    %c0_52 = arith.constant 0 : index
    %143 = vector.load %arg6[%c0_51, %c0_52] : memref<1x32xf32, #tpu.memory_space<vmem>>, vector<1x32xf32>
    %c0_53 = arith.constant 0 : index
    %c0_54 = arith.constant 0 : index
    %144 = vector.load %arg7[%c0_53, %c0_54] : memref<1x32xf32, #tpu.memory_space<vmem>>, vector<1x32xf32>
    %cst_55 = arith.constant dense<0.000000e+00> : vector<8xf32>
    %145 = vector.multi_reduction <add>, %1, %cst_55 [1] : vector<8x32xf32> to vector<8xf32>
    %146 = vector.shape_cast %145 : vector<8xf32> to vector<8x1xf32>
    %cst_56 = arith.constant 3.200000e+01 : f32
    %147 = vector.broadcast %cst_56 : f32 to vector<8x1xf32>
    %148 = arith.divf %146, %147 : vector<8x1xf32>
    %149 = vector.broadcast %148 : vector<8x1xf32> to vector<8x32xf32>
    %150 = arith.subf %1, %149 : vector<8x32xf32>
    %151 = arith.mulf %150, %150 : vector<8x32xf32>
    %cst_57 = arith.constant dense<0.000000e+00> : vector<8xf32>
    %152 = vector.multi_reduction <add>, %151, %cst_57 [1] : vector<8x32xf32> to vector<8xf32>
    %153 = vector.shape_cast %152 : vector<8xf32> to vector<8x1xf32>
    %cst_58 = arith.constant 3.200000e+01 : f32
    %154 = vector.broadcast %cst_58 : f32 to vector<8x1xf32>
    %155 = arith.divf %153, %154 : vector<8x1xf32>
    %156 = vector.broadcast %148 : vector<8x1xf32> to vector<8x32xf32>
    %157 = arith.subf %1, %156 : vector<8x32xf32>
    %cst_59 = arith.constant 9.99999974E-6 : f32
    %158 = vector.broadcast %cst_59 : f32 to vector<8x1xf32>
    %159 = arith.addf %155, %158 : vector<8x1xf32>
    %160 = math.rsqrt %159 : vector<8x1xf32>
    %161 = vector.broadcast %160 : vector<8x1xf32> to vector<8x32xf32>
    %162 = arith.mulf %157, %161 : vector<8x32xf32>
    %163 = vector.broadcast %143 : vector<1x32xf32> to vector<8x32xf32>
    %164 = arith.mulf %162, %163 : vector<8x32xf32>
    %165 = vector.broadcast %144 : vector<1x32xf32> to vector<8x32xf32>
    %166 = arith.addf %164, %165 : vector<8x32xf32>
    %167 = arith.truncf %166 : vector<8x32xf32> to vector<8x32xbf16>
    %c0_60 = arith.constant 0 : index
    %c0_61 = arith.constant 0 : index
    %168 = vector.load %arg12[%c0_60, %c0_61] : memref<32x128xbf16, #tpu.memory_space<vmem>>, vector<32x128xbf16>
    %cst_62 = arith.constant dense<0.000000e+00> : vector<8x128xf32>
    %169 = tpu.matmul %167, %168, %cst_62 {dimension_numbers = #tpu.dot_dimension_numbers<[1], [0], [0], [1], [0, 0, 1, 1], [], []>} : vector<8x32xbf16>, vector<32x128xbf16>, vector<8x128xf32> -> vector<8x128xf32>
    %c0_63 = arith.constant 0 : index
    %c0_64 = arith.constant 0 : index
    %170 = vector.load %arg13[%c0_63, %c0_64] : memref<1x128xf32, #tpu.memory_space<vmem>>, vector<1x128xf32>
    %171 = vector.broadcast %170 : vector<1x128xf32> to vector<8x128xf32>
    %172 = arith.addf %169, %171 : vector<8x128xf32>
    %cst_65 = arith.constant 5.000000e-01 : f32
    %173 = vector.broadcast %cst_65 : f32 to vector<8x128xf32>
    %174 = arith.mulf %173, %172 : vector<8x128xf32>
    %cst_66 = arith.constant 4.471500e-02 : f32
    %175 = vector.broadcast %cst_66 : f32 to vector<8x128xf32>
    %176 = arith.mulf %175, %172 : vector<8x128xf32>
    %177 = arith.mulf %176, %172 : vector<8x128xf32>
    %178 = arith.mulf %177, %172 : vector<8x128xf32>
    %179 = arith.addf %172, %178 : vector<8x128xf32>
    %cst_67 = arith.constant 0.797884583 : f32
    %180 = vector.broadcast %cst_67 : f32 to vector<8x128xf32>
    %181 = arith.mulf %180, %179 : vector<8x128xf32>
    %182 = math.tanh %181 : vector<8x128xf32>
    %cst_68 = arith.constant 1.000000e+00 : f32
    %183 = vector.broadcast %cst_68 : f32 to vector<8x128xf32>
    %184 = arith.addf %183, %182 : vector<8x128xf32>
    %185 = arith.mulf %174, %184 : vector<8x128xf32>
    %186 = arith.truncf %185 : vector<8x128xf32> to vector<8x128xbf16>
    %c0_69 = arith.constant 0 : index
    %c0_70 = arith.constant 0 : index
    %187 = vector.load %arg14[%c0_69, %c0_70] : memref<128x32xbf16, #tpu.memory_space<vmem>>, vector<128x32xbf16>
    %cst_71 = arith.constant dense<0.000000e+00> : vector<8x32xf32>
    %188 = tpu.matmul %186, %187, %cst_71 {dimension_numbers = #tpu.dot_dimension_numbers<[1], [0], [0], [1], [0, 0, 1, 1], [], []>} : vector<8x128xbf16>, vector<128x32xbf16>, vector<8x32xf32> -> vector<8x32xf32>
    %c0_72 = arith.constant 0 : index
    %c0_73 = arith.constant 0 : index
    %189 = vector.load %arg15[%c0_72, %c0_73] : memref<1x32xf32, #tpu.memory_space<vmem>>, vector<1x32xf32>
    %190 = vector.broadcast %189 : vector<1x32xf32> to vector<8x32xf32>
    %191 = arith.addf %188, %190 : vector<8x32xf32>
    %192 = arith.addf %142, %191 : vector<8x32xf32>
    %193 = arith.addf %192, %1 : vector<8x32xf32>
    %c0_74 = arith.constant 0 : index
    %c0_75 = arith.constant 0 : index
    %c0_76 = arith.constant 0 : index
    %194 = vector.load %arg16[%c0_74, %c0_75, %c0_76] : memref<1x8x32xf32, #tpu.memory_space<vmem>>, vector<1x8x32xf32>
    %195 = vector.shape_cast %194 : vector<1x8x32xf32> to vector<8x32xf32>
    %196 = vector.shape_cast %193 : vector<8x32xf32> to vector<1x8x32xf32>
    tpu.vector_store %arg16[%c0_74, %c0_75, %c0_76], %196 {strides = array<i32>} : memref<1x8x32xf32, #tpu.memory_space<vmem>>, vector<1x8x32xf32>,
    return
  }
  func.func @transform_0(%arg0: i32) -> (i32, i32, i32) {
    %c0_i32 = arith.constant 0 : i32
    %c0_i32_0 = arith.constant 0 : i32
    %c0_i32_1 = arith.constant 0 : i32
    return %arg0, %c0_i32, %c0_i32_0 : i32, i32, i32
  }
  func.func @transform_1(%arg0: i32) -> (i32, i32) {
    %c0_i32 = arith.constant 0 : i32
    %c0_i32_0 = arith.constant 0 : i32
    %c0_i32_1 = arith.constant 0 : i32
    return %c0_i32, %c0_i32_0 : i32, i32
  }
  func.func @transform_2(%arg0: i32) -> (i32, i32) {
    %c0_i32 = arith.constant 0 : i32
    %c0_i32_0 = arith.constant 0 : i32
    %c0_i32_1 = arith.constant 0 : i32
    return %c0_i32, %c0_i32_0 : i32, i32
  }
  func.func @transform_3(%arg0: i32) -> (i32, i32) {
    %c0_i32 = arith.constant 0 : i32
    %c0_i32_0 = arith.constant 0 : i32
    %c0_i32_1 = arith.constant 0 : i32
    return %c0_i32, %c0_i32_0 : i32, i32
  }
  func.func @transform_4(%arg0: i32) -> (i32, i32) {
    %c0_i32 = arith.constant 0 : i32
    %c0_i32_0 = arith.constant 0 : i32
    %c0_i32_1 = arith.constant 0 : i32
    return %c0_i32, %c0_i32_0 : i32, i32
  }
  func.func @transform_5(%arg0: i32) -> (i32, i32) {
    %c0_i32 = arith.constant 0 : i32
    %c0_i32_0 = arith.constant 0 : i32
    %c0_i32_1 = arith.constant 0 : i32
    return %c0_i32, %c0_i32_0 : i32, i32
  }
  func.func @transform_6(%arg0: i32) -> (i32, i32) {
    %c0_i32 = arith.constant 0 : i32
    %c0_i32_0 = arith.constant 0 : i32
    %c0_i32_1 = arith.constant 0 : i32
    return %c0_i32, %c0_i32_0 : i32, i32
  }
  func.func @transform_7(%arg0: i32) -> (i32, i32) {
    %c0_i32 = arith.constant 0 : i32
    %c0_i32_0 = arith.constant 0 : i32
    %c0_i32_1 = arith.constant 0 : i32
    return %c0_i32, %c0_i32_0 : i32, i32
  }
  func.func @transform_8(%arg0: i32) -> (i32, i32) {
    %c0_i32 = arith.constant 0 : i32
    %c0_i32_0 = arith.constant 0 : i32
    %c0_i32_1 = arith.constant 0 : i32
    return %c0_i32, %c0_i32_0 : i32, i32
  }
  func.func @transform_9(%arg0: i32) -> (i32, i32) {
    %c0_i32 = arith.constant 0 : i32
    %c0_i32_0 = arith.constant 0 : i32
    %c0_i32_1 = arith.constant 0 : i32
    return %c0_i32, %c0_i32_0 : i32, i32
  }
  func.func @transform_10(%arg0: i32) -> (i32, i32) {
    %c0_i32 = arith.constant 0 : i32
    %c0_i32_0 = arith.constant 0 : i32
    %c0_i32_1 = arith.constant 0 : i32
    return %c0_i32, %c0_i32_0 : i32, i32
  }
  func.func @transform_11(%arg0: i32) -> (i32, i32) {
    %c0_i32 = arith.constant 0 : i32
    %c0_i32_0 = arith.constant 0 : i32
    %c0_i32_1 = arith.constant 0 : i32
    return %c0_i32, %c0_i32_0 : i32, i32
  }
  func.func @transform_12(%arg0: i32) -> (i32, i32) {
    %c0_i32 = arith.constant 0 : i32
    %c0_i32_0 = arith.constant 0 : i32
    %c0_i32_1 = arith.constant 0 : i32
    return %c0_i32, %c0_i32_0 : i32, i32
  }
  func.func @transform_13(%arg0: i32) -> (i32, i32) {
    %c0_i32 = arith.constant 0 : i32
    %c0_i32_0 = arith.constant 0 : i32
    %c0_i32_1 = arith.constant 0 : i32
    return %c0_i32, %c0_i32_0 : i32, i32
  }
  func.func @transform_14(%arg0: i32) -> (i32, i32) {
    %c0_i32 = arith.constant 0 : i32
    %c0_i32_0 = arith.constant 0 : i32
    %c0_i32_1 = arith.constant 0 : i32
    return %c0_i32, %c0_i32_0 : i32, i32
  }
  func.func @transform_15(%arg0: i32) -> (i32, i32, i32) {
    %c0_i32 = arith.constant 0 : i32
    %c0_i32_0 = arith.constant 0 : i32
    %c0_i32_1 = arith.constant 0 : i32
    return %arg0, %c0_i32, %c0_i32_0 : i32, i32, i32
  }
}

module attributes {stable_mosaic.version = 11 : i64} {
  func.func @_block_kernel(%arg0: i32, %arg1: memref<1x8x32xf32, #tpu.memory_space<vmem>>, %arg2: memref<8x32xf32, #tpu.memory_space<vmem>>, %arg3: memref<8x32xf32, #tpu.memory_space<vmem>>, %arg4: memref<1x32xf32, #tpu.memory_space<vmem>>, %arg5: memref<1x32xf32, #tpu.memory_space<vmem>>, %arg6: memref<1x32xf32, #tpu.memory_space<vmem>>, %arg7: memref<1x32xf32, #tpu.memory_space<vmem>>, %arg8: memref<32x160xbf16, #tpu.memory_space<vmem>>, %arg9: memref<1x160xf32, #tpu.memory_space<vmem>>, %arg10: memref<32x32xbf16, #tpu.memory_space<vmem>>, %arg11: memref<1x32xf32, #tpu.memory_space<vmem>>, %arg12: memref<32x128xbf16, #tpu.memory_space<vmem>>, %arg13: memref<1x128xf32, #tpu.memory_space<vmem>>, %arg14: memref<128x32xbf16, #tpu.memory_space<vmem>>, %arg15: memref<1x32xf32, #tpu.memory_space<vmem>>, %arg16: memref<1x8x32xf32, #tpu.memory_space<vmem>>, %arg17: memref<8x32xf32, #tpu.memory_space<vmem>>) attributes {dimension_semantics = [#tpu.dimension_semantics<parallel>], iteration_bounds = array<i64: 2>, scalar_prefetch = 0 : i64, scratch_operands = 1 : i64, tpu.core_type = #tpu.core_type<tc>, window_params = [{transform_indices = @transform_0, window_bounds = array<i64: 1, 8, 32>}, {pipeline_mode = #tpu.pipeline_mode<synchronous>, transform_indices = @transform_1, window_bounds = array<i64: 8, 32>}, {pipeline_mode = #tpu.pipeline_mode<synchronous>, transform_indices = @transform_2, window_bounds = array<i64: 8, 32>}, {pipeline_mode = #tpu.pipeline_mode<synchronous>, transform_indices = @transform_3, window_bounds = array<i64: 1, 32>}, {pipeline_mode = #tpu.pipeline_mode<synchronous>, transform_indices = @transform_4, window_bounds = array<i64: 1, 32>}, {pipeline_mode = #tpu.pipeline_mode<synchronous>, transform_indices = @transform_5, window_bounds = array<i64: 1, 32>}, {pipeline_mode = #tpu.pipeline_mode<synchronous>, transform_indices = @transform_6, window_bounds = array<i64: 1, 32>}, {pipeline_mode = #tpu.pipeline_mode<synchronous>, transform_indices = @transform_7, window_bounds = array<i64: 32, 160>}, {pipeline_mode = #tpu.pipeline_mode<synchronous>, transform_indices = @transform_8, window_bounds = array<i64: 1, 160>}, {pipeline_mode = #tpu.pipeline_mode<synchronous>, transform_indices = @transform_9, window_bounds = array<i64: 32, 32>}, {pipeline_mode = #tpu.pipeline_mode<synchronous>, transform_indices = @transform_10, window_bounds = array<i64: 1, 32>}, {pipeline_mode = #tpu.pipeline_mode<synchronous>, transform_indices = @transform_11, window_bounds = array<i64: 32, 128>}, {pipeline_mode = #tpu.pipeline_mode<synchronous>, transform_indices = @transform_12, window_bounds = array<i64: 1, 128>}, {pipeline_mode = #tpu.pipeline_mode<synchronous>, transform_indices = @transform_13, window_bounds = array<i64: 128, 32>}, {pipeline_mode = #tpu.pipeline_mode<synchronous>, transform_indices = @transform_14, window_bounds = array<i64: 1, 32>}, {transform_indices = @transform_15, window_bounds = array<i64: 1, 8, 32>}]} {
    %c0 = arith.constant 0 : index
    %c0_0 = arith.constant 0 : index
    %c0_1 = arith.constant 0 : index
    %0 = vector.load %arg1[%c0, %c0_0, %c0_1] : memref<1x8x32xf32, #tpu.memory_space<vmem>>, vector<1x8x32xf32>
    %1 = vector.shape_cast %0 : vector<1x8x32xf32> to vector<8x32xf32>
    %c0_2 = arith.constant 0 : index
    %c0_3 = arith.constant 0 : index
    %2 = vector.load %arg2[%c0_2, %c0_3] : memref<8x32xf32, #tpu.memory_space<vmem>>, vector<8x32xf32>
    %c0_4 = arith.constant 0 : index
    %c0_5 = arith.constant 0 : index
    %3 = vector.load %arg3[%c0_4, %c0_5] : memref<8x32xf32, #tpu.memory_space<vmem>>, vector<8x32xf32>
    %c0_6 = arith.constant 0 : index
    %c0_7 = arith.constant 0 : index
    %4 = vector.load %arg4[%c0_6, %c0_7] : memref<1x32xf32, #tpu.memory_space<vmem>>, vector<1x32xf32>
    %c0_8 = arith.constant 0 : index
    %c0_9 = arith.constant 0 : index
    %5 = vector.load %arg5[%c0_8, %c0_9] : memref<1x32xf32, #tpu.memory_space<vmem>>, vector<1x32xf32>
    %cst = arith.constant dense<0.000000e+00> : vector<8xf32>
    %6 = vector.multi_reduction <add>, %1, %cst [1] : vector<8x32xf32> to vector<8xf32>
    %7 = vector.shape_cast %6 : vector<8xf32> to vector<8x1xf32>
    %cst_10 = arith.constant 3.200000e+01 : f32
    %8 = vector.broadcast %cst_10 : f32 to vector<8x1xf32>
    %9 = arith.divf %7, %8 : vector<8x1xf32>
    %10 = vector.broadcast %9 : vector<8x1xf32> to vector<8x32xf32>
    %11 = arith.subf %1, %10 : vector<8x32xf32>
    %12 = arith.mulf %11, %11 : vector<8x32xf32>
    %cst_11 = arith.constant dense<0.000000e+00> : vector<8xf32>
    %13 = vector.multi_reduction <add>, %12, %cst_11 [1] : vector<8x32xf32> to vector<8xf32>
    %14 = vector.shape_cast %13 : vector<8xf32> to vector<8x1xf32>
    %cst_12 = arith.constant 3.200000e+01 : f32
    %15 = vector.broadcast %cst_12 : f32 to vector<8x1xf32>
    %16 = arith.divf %14, %15 : vector<8x1xf32>
    %17 = vector.broadcast %9 : vector<8x1xf32> to vector<8x32xf32>
    %18 = arith.subf %1, %17 : vector<8x32xf32>
    %cst_13 = arith.constant 9.99999974E-6 : f32
    %19 = vector.broadcast %cst_13 : f32 to vector<8x1xf32>
    %20 = arith.addf %16, %19 : vector<8x1xf32>
    %21 = math.rsqrt %20 : vector<8x1xf32>
    %22 = vector.broadcast %21 : vector<8x1xf32> to vector<8x32xf32>
    %23 = arith.mulf %18, %22 : vector<8x32xf32>
    %24 = vector.broadcast %4 : vector<1x32xf32> to vector<8x32xf32>
    %25 = arith.mulf %23, %24 : vector<8x32xf32>
    %26 = vector.broadcast %5 : vector<1x32xf32> to vector<8x32xf32>
    %27 = arith.addf %25, %26 : vector<8x32xf32>
    %28 = arith.truncf %27 : vector<8x32xf32> to vector<8x32xbf16>
    %c0_14 = arith.constant 0 : index
    %c0_15 = arith.constant 0 : index
    %29 = vector.load %arg8[%c0_14, %c0_15] : memref<32x160xbf16, #tpu.memory_space<vmem>>, vector<32x160xbf16>
    %cst_16 = arith.constant dense<0.000000e+00> : vector<8x160xf32>
    %30 = tpu.matmul %28, %29, %cst_16 {dimension_numbers = #tpu.dot_dimension_numbers<[1], [0], [0], [1], [0, 0, 1, 1], [], []>} : vector<8x32xbf16>, vector<32x160xbf16>, vector<8x160xf32> -> vector<8x160xf32>
    %c0_17 = arith.constant 0 : index
    %c0_18 = arith.constant 0 : index
    %31 = vector.load %arg9[%c0_17, %c0_18] : memref<1x160xf32, #tpu.memory_space<vmem>>, vector<1x160xf32>
    %32 = vector.broadcast %31 : vector<1x160xf32> to vector<8x160xf32>
    %33 = arith.addf %30, %32 : vector<8x160xf32>
    %34 = vector.extract_strided_slice %33 {offsets = [0, 0], sizes = [8, 32], strides = [1, 1]} : vector<8x160xf32> to vector<8x32xf32>
    %35 = arith.mulf %34, %3 : vector<8x32xf32>
    %36 = vector.extract_strided_slice %33 {offsets = [0, 96], sizes = [8, 32], strides = [1, 1]} : vector<8x160xf32> to vector<8x32xf32>
    %37 = arith.mulf %36, %2 : vector<8x32xf32>
    %38 = arith.addf %35, %37 : vector<8x32xf32>
    %39 = vector.extract_strided_slice %33 {offsets = [0, 32], sizes = [8, 32], strides = [1, 1]} : vector<8x160xf32> to vector<8x32xf32>
    %40 = arith.mulf %39, %3 : vector<8x32xf32>
    %41 = vector.extract_strided_slice %33 {offsets = [0, 128], sizes = [8, 32], strides = [1, 1]} : vector<8x160xf32> to vector<8x32xf32>
    %42 = arith.mulf %41, %2 : vector<8x32xf32>
    %43 = arith.addf %40, %42 : vector<8x32xf32>
    %44 = vector.extract_strided_slice %33 {offsets = [0, 64], sizes = [8, 32], strides = [1, 1]} : vector<8x160xf32> to vector<8x32xf32>
    %45 = tpu.iota {dimensions = array<i32: 0>} : vector<8x8xi32>
    %46 = tpu.iota {dimensions = array<i32: 1>} : vector<8x8xi32>
    %47 = arith.cmpi sge, %45, %46 : vector<8x8xi32>
    %48 = vector.extract_strided_slice %38 {offsets = [0, 0], sizes = [8, 8], strides = [1, 1]} : vector<8x32xf32> to vector<8x8xf32>
    %49 = arith.truncf %48 : vector<8x8xf32> to vector<8x8xbf16>
    %50 = vector.extract_strided_slice %43 {offsets = [0, 0], sizes = [8, 8], strides = [1, 1]} : vector<8x32xf32> to vector<8x8xf32>
    %51 = arith.truncf %50 : vector<8x8xf32> to vector<8x8xbf16>
    %52 = vector.extract_strided_slice %44 {offsets = [0, 0], sizes = [8, 8], strides = [1, 1]} : vector<8x32xf32> to vector<8x8xf32>
    %53 = arith.truncf %52 : vector<8x8xf32> to vector<8x8xbf16>
    %cst_19 = arith.constant dense<0.000000e+00> : vector<8x8xf32>
    %54 = tpu.matmul %49, %51, %cst_19 {dimension_numbers = #tpu.dot_dimension_numbers<[1], [1], [0], [0], [0, 0, 1, 0], [], []>} : vector<8x8xbf16>, vector<8x8xbf16>, vector<8x8xf32> -> vector<8x8xf32>
    %cst_20 = arith.constant -1.000000e+30 : f32
    %55 = vector.broadcast %cst_20 : f32 to vector<8x8xf32>
    %56 = arith.select %47, %54, %55 : vector<8x8xi1>, vector<8x8xf32>
    %cst_21 = arith.constant dense<0xFF800000> : vector<8xf32>
    %57 = vector.multi_reduction <maximumf>, %56, %cst_21 [1] : vector<8x8xf32> to vector<8xf32>
    %58 = vector.shape_cast %57 : vector<8xf32> to vector<8x1xf32>
    %59 = vector.broadcast %58 : vector<8x1xf32> to vector<8x8xf32>
    %60 = arith.subf %56, %59 : vector<8x8xf32>
    %61 = math.exp %60 : vector<8x8xf32>
    %cst_22 = arith.constant dense<0.000000e+00> : vector<8xf32>
    %62 = vector.multi_reduction <add>, %61, %cst_22 [1] : vector<8x8xf32> to vector<8xf32>
    %63 = vector.shape_cast %62 : vector<8xf32> to vector<8x1xf32>
    %64 = arith.truncf %61 : vector<8x8xf32> to vector<8x8xbf16>
    %cst_23 = arith.constant dense<0.000000e+00> : vector<8x8xf32>
    %65 = tpu.matmul %64, %53, %cst_23 {dimension_numbers = #tpu.dot_dimension_numbers<[1], [0], [0], [1], [0, 0, 1, 1], [], []>} : vector<8x8xbf16>, vector<8x8xbf16>, vector<8x8xf32> -> vector<8x8xf32>
    %66 = tpu.reciprocal %63 {approx = true} : vector<8x1xf32> -> vector<8x1xf32>
    %67 = vector.broadcast %66 : vector<8x1xf32> to vector<8x8xf32>
    %68 = arith.mulf %65, %67 : vector<8x8xf32>
    %c0_24 = arith.constant 0 : index
    %c0_25 = arith.constant 0 : index
    %69 = vector.load %arg17[%c0_24, %c0_25] : memref<8x32xf32, #tpu.memory_space<vmem>>, vector<8x8xf32>
    tpu.vector_store %arg17[%c0_24, %c0_25], %68 {strides = array<i32>} : memref<8x32xf32, #tpu.memory_space<vmem>>, vector<8x8xf32>,
    %70 = vector.extract_strided_slice %38 {offsets = [0, 8], sizes = [8, 8], strides = [1, 1]} : vector<8x32xf32> to vector<8x8xf32>
    %71 = arith.truncf %70 : vector<8x8xf32> to vector<8x8xbf16>
    %72 = vector.extract_strided_slice %43 {offsets = [0, 8], sizes = [8, 8], strides = [1, 1]} : vector<8x32xf32> to vector<8x8xf32>
    %73 = arith.truncf %72 : vector<8x8xf32> to vector<8x8xbf16>
    %74 = vector.extract_strided_slice %44 {offsets = [0, 8], sizes = [8, 8], strides = [1, 1]} : vector<8x32xf32> to vector<8x8xf32>
    %75 = arith.truncf %74 : vector<8x8xf32> to vector<8x8xbf16>
    %cst_26 = arith.constant dense<0.000000e+00> : vector<8x8xf32>
    %76 = tpu.matmul %71, %73, %cst_26 {dimension_numbers = #tpu.dot_dimension_numbers<[1], [1], [0], [0], [0, 0, 1, 0], [], []>} : vector<8x8xbf16>, vector<8x8xbf16>, vector<8x8xf32> -> vector<8x8xf32>
    %cst_27 = arith.constant -1.000000e+30 : f32
    %77 = vector.broadcast %cst_27 : f32 to vector<8x8xf32>
    %78 = arith.select %47, %76, %77 : vector<8x8xi1>, vector<8x8xf32>
    %cst_28 = arith.constant dense<0xFF800000> : vector<8xf32>
    %79 = vector.multi_reduction <maximumf>, %78, %cst_28 [1] : vector<8x8xf32> to vector<8xf32>
    %80 = vector.shape_cast %79 : vector<8xf32> to vector<8x1xf32>
    %81 = vector.broadcast %80 : vector<8x1xf32> to vector<8x8xf32>
    %82 = arith.subf %78, %81 : vector<8x8xf32>
    %83 = math.exp %82 : vector<8x8xf32>
    %cst_29 = arith.constant dense<0.000000e+00> : vector<8xf32>
    %84 = vector.multi_reduction <add>, %83, %cst_29 [1] : vector<8x8xf32> to vector<8xf32>
    %85 = vector.shape_cast %84 : vector<8xf32> to vector<8x1xf32>
    %86 = arith.truncf %83 : vector<8x8xf32> to vector<8x8xbf16>
    %cst_30 = arith.constant dense<0.000000e+00> : vector<8x8xf32>
    %87 = tpu.matmul %86, %75, %cst_30 {dimension_numbers = #tpu.dot_dimension_numbers<[1], [0], [0], [1], [0, 0, 1, 1], [], []>} : vector<8x8xbf16>, vector<8x8xbf16>, vector<8x8xf32> -> vector<8x8xf32>
    %88 = tpu.reciprocal %85 {approx = true} : vector<8x1xf32> -> vector<8x1xf32>
    %89 = vector.broadcast %88 : vector<8x1xf32> to vector<8x8xf32>
    %90 = arith.mulf %87, %89 : vector<8x8xf32>
    %c0_31 = arith.constant 0 : index
    %c8 = arith.constant 8 : index
    %91 = vector.load %arg17[%c0_31, %c8] : memref<8x32xf32, #tpu.memory_space<vmem>>, vector<8x8xf32>
    tpu.vector_store %arg17[%c0_31, %c8], %90 {strides = array<i32>} : memref<8x32xf32, #tpu.memory_space<vmem>>, vector<8x8xf32>,
    %92 = vector.extract_strided_slice %38 {offsets = [0, 16], sizes = [8, 8], strides = [1, 1]} : vector<8x32xf32> to vector<8x8xf32>
    %93 = arith.truncf %92 : vector<8x8xf32> to vector<8x8xbf16>
    %94 = vector.extract_strided_slice %43 {offsets = [0, 16], sizes = [8, 8], strides = [1, 1]} : vector<8x32xf32> to vector<8x8xf32>
    %95 = arith.truncf %94 : vector<8x8xf32> to vector<8x8xbf16>
    %96 = vector.extract_strided_slice %44 {offsets = [0, 16], sizes = [8, 8], strides = [1, 1]} : vector<8x32xf32> to vector<8x8xf32>
    %97 = arith.truncf %96 : vector<8x8xf32> to vector<8x8xbf16>
    %cst_32 = arith.constant dense<0.000000e+00> : vector<8x8xf32>
    %98 = tpu.matmul %93, %95, %cst_32 {dimension_numbers = #tpu.dot_dimension_numbers<[1], [1], [0], [0], [0, 0, 1, 0], [], []>} : vector<8x8xbf16>, vector<8x8xbf16>, vector<8x8xf32> -> vector<8x8xf32>
    %cst_33 = arith.constant -1.000000e+30 : f32
    %99 = vector.broadcast %cst_33 : f32 to vector<8x8xf32>
    %100 = arith.select %47, %98, %99 : vector<8x8xi1>, vector<8x8xf32>
    %cst_34 = arith.constant dense<0xFF800000> : vector<8xf32>
    %101 = vector.multi_reduction <maximumf>, %100, %cst_34 [1] : vector<8x8xf32> to vector<8xf32>
    %102 = vector.shape_cast %101 : vector<8xf32> to vector<8x1xf32>
    %103 = vector.broadcast %102 : vector<8x1xf32> to vector<8x8xf32>
    %104 = arith.subf %100, %103 : vector<8x8xf32>
    %105 = math.exp %104 : vector<8x8xf32>
    %cst_35 = arith.constant dense<0.000000e+00> : vector<8xf32>
    %106 = vector.multi_reduction <add>, %105, %cst_35 [1] : vector<8x8xf32> to vector<8xf32>
    %107 = vector.shape_cast %106 : vector<8xf32> to vector<8x1xf32>
    %108 = arith.truncf %105 : vector<8x8xf32> to vector<8x8xbf16>
    %cst_36 = arith.constant dense<0.000000e+00> : vector<8x8xf32>
    %109 = tpu.matmul %108, %97, %cst_36 {dimension_numbers = #tpu.dot_dimension_numbers<[1], [0], [0], [1], [0, 0, 1, 1], [], []>} : vector<8x8xbf16>, vector<8x8xbf16>, vector<8x8xf32> -> vector<8x8xf32>
    %110 = tpu.reciprocal %107 {approx = true} : vector<8x1xf32> -> vector<8x1xf32>
    %111 = vector.broadcast %110 : vector<8x1xf32> to vector<8x8xf32>
    %112 = arith.mulf %109, %111 : vector<8x8xf32>
    %c0_37 = arith.constant 0 : index
    %c16 = arith.constant 16 : index
    %113 = vector.load %arg17[%c0_37, %c16] : memref<8x32xf32, #tpu.memory_space<vmem>>, vector<8x8xf32>
    tpu.vector_store %arg17[%c0_37, %c16], %112 {strides = array<i32>} : memref<8x32xf32, #tpu.memory_space<vmem>>, vector<8x8xf32>,
    %114 = vector.extract_strided_slice %38 {offsets = [0, 24], sizes = [8, 8], strides = [1, 1]} : vector<8x32xf32> to vector<8x8xf32>
    %115 = arith.truncf %114 : vector<8x8xf32> to vector<8x8xbf16>
    %116 = vector.extract_strided_slice %43 {offsets = [0, 24], sizes = [8, 8], strides = [1, 1]} : vector<8x32xf32> to vector<8x8xf32>
    %117 = arith.truncf %116 : vector<8x8xf32> to vector<8x8xbf16>
    %118 = vector.extract_strided_slice %44 {offsets = [0, 24], sizes = [8, 8], strides = [1, 1]} : vector<8x32xf32> to vector<8x8xf32>
    %119 = arith.truncf %118 : vector<8x8xf32> to vector<8x8xbf16>
    %cst_38 = arith.constant dense<0.000000e+00> : vector<8x8xf32>
    %120 = tpu.matmul %115, %117, %cst_38 {dimension_numbers = #tpu.dot_dimension_numbers<[1], [1], [0], [0], [0, 0, 1, 0], [], []>} : vector<8x8xbf16>, vector<8x8xbf16>, vector<8x8xf32> -> vector<8x8xf32>
    %cst_39 = arith.constant -1.000000e+30 : f32
    %121 = vector.broadcast %cst_39 : f32 to vector<8x8xf32>
    %122 = arith.select %47, %120, %121 : vector<8x8xi1>, vector<8x8xf32>
    %cst_40 = arith.constant dense<0xFF800000> : vector<8xf32>
    %123 = vector.multi_reduction <maximumf>, %122, %cst_40 [1] : vector<8x8xf32> to vector<8xf32>
    %124 = vector.shape_cast %123 : vector<8xf32> to vector<8x1xf32>
    %125 = vector.broadcast %124 : vector<8x1xf32> to vector<8x8xf32>
    %126 = arith.subf %122, %125 : vector<8x8xf32>
    %127 = math.exp %126 : vector<8x8xf32>
    %cst_41 = arith.constant dense<0.000000e+00> : vector<8xf32>
    %128 = vector.multi_reduction <add>, %127, %cst_41 [1] : vector<8x8xf32> to vector<8xf32>
    %129 = vector.shape_cast %128 : vector<8xf32> to vector<8x1xf32>
    %130 = arith.truncf %127 : vector<8x8xf32> to vector<8x8xbf16>
    %cst_42 = arith.constant dense<0.000000e+00> : vector<8x8xf32>
    %131 = tpu.matmul %130, %119, %cst_42 {dimension_numbers = #tpu.dot_dimension_numbers<[1], [0], [0], [1], [0, 0, 1, 1], [], []>} : vector<8x8xbf16>, vector<8x8xbf16>, vector<8x8xf32> -> vector<8x8xf32>
    %132 = tpu.reciprocal %129 {approx = true} : vector<8x1xf32> -> vector<8x1xf32>
    %133 = vector.broadcast %132 : vector<8x1xf32> to vector<8x8xf32>
    %134 = arith.mulf %131, %133 : vector<8x8xf32>
    %c0_43 = arith.constant 0 : index
    %c24 = arith.constant 24 : index
    %135 = vector.load %arg17[%c0_43, %c24] : memref<8x32xf32, #tpu.memory_space<vmem>>, vector<8x8xf32>
    tpu.vector_store %arg17[%c0_43, %c24], %134 {strides = array<i32>} : memref<8x32xf32, #tpu.memory_space<vmem>>, vector<8x8xf32>,
    %c0_44 = arith.constant 0 : index
    %c0_45 = arith.constant 0 : index
    %136 = vector.load %arg17[%c0_44, %c0_45] : memref<8x32xf32, #tpu.memory_space<vmem>>, vector<8x32xf32>
    %137 = arith.truncf %136 : vector<8x32xf32> to vector<8x32xbf16>
    %c0_46 = arith.constant 0 : index
    %c0_47 = arith.constant 0 : index
    %138 = vector.load %arg10[%c0_46, %c0_47] : memref<32x32xbf16, #tpu.memory_space<vmem>>, vector<32x32xbf16>
    %cst_48 = arith.constant dense<0.000000e+00> : vector<8x32xf32>
    %139 = tpu.matmul %137, %138, %cst_48 {dimension_numbers = #tpu.dot_dimension_numbers<[1], [0], [0], [1], [0, 0, 1, 1], [], []>} : vector<8x32xbf16>, vector<32x32xbf16>, vector<8x32xf32> -> vector<8x32xf32>
    %c0_49 = arith.constant 0 : index
    %c0_50 = arith.constant 0 : index
    %140 = vector.load %arg11[%c0_49, %c0_50] : memref<1x32xf32, #tpu.memory_space<vmem>>, vector<1x32xf32>
    %141 = vector.broadcast %140 : vector<1x32xf32> to vector<8x32xf32>
    %142 = arith.addf %139, %141 : vector<8x32xf32>
    %c0_51 = arith.constant 0 : index
    %c0_52 = arith.constant 0 : index
    %143 = vector.load %arg6[%c0_51, %c0_52] : memref<1x32xf32, #tpu.memory_space<vmem>>, vector<1x32xf32>
    %c0_53 = arith.constant 0 : index
    %c0_54 = arith.constant 0 : index
    %144 = vector.load %arg7[%c0_53, %c0_54] : memref<1x32xf32, #tpu.memory_space<vmem>>, vector<1x32xf32>
    %cst_55 = arith.constant dense<0.000000e+00> : vector<8xf32>
    %145 = vector.multi_reduction <add>, %1, %cst_55 [1] : vector<8x32xf32> to vector<8xf32>
    %146 = vector.shape_cast %145 : vector<8xf32> to vector<8x1xf32>
    %cst_56 = arith.constant 3.200000e+01 : f32
    %147 = vector.broadcast %cst_56 : f32 to vector<8x1xf32>
    %148 = arith.divf %146, %147 : vector<8x1xf32>
    %149 = vector.broadcast %148 : vector<8x1xf32> to vector<8x32xf32>
    %150 = arith.subf %1, %149 : vector<8x32xf32>
    %151 = arith.mulf %150, %150 : vector<8x32xf32>
    %cst_57 = arith.constant dense<0.000000e+00> : vector<8xf32>
    %152 = vector.multi_reduction <add>, %151, %cst_57 [1] : vector<8x32xf32> to vector<8xf32>
    %153 = vector.shape_cast %152 : vector<8xf32> to vector<8x1xf32>
    %cst_58 = arith.constant 3.200000e+01 : f32
    %154 = vector.broadcast %cst_58 : f32 to vector<8x1xf32>
    %155 = arith.divf %153, %154 : vector<8x1xf32>
    %156 = vector.broadcast %148 : vector<8x1xf32> to vector<8x32xf32>
    %157 = arith.subf %1, %156 : vector<8x32xf32>
    %cst_59 = arith.constant 9.99999974E-6 : f32
    %158 = vector.broadcast %cst_59 : f32 to vector<8x1xf32>
    %159 = arith.addf %155, %158 : vector<8x1xf32>
    %160 = math.rsqrt %159 : vector<8x1xf32>
    %161 = vector.broadcast %160 : vector<8x1xf32> to vector<8x32xf32>
    %162 = arith.mulf %157, %161 : vector<8x32xf32>
    %163 = vector.broadcast %143 : vector<1x32xf32> to vector<8x32xf32>
    %164 = arith.mulf %162, %163 : vector<8x32xf32>
    %165 = vector.broadcast %144 : vector<1x32xf32> to vector<8x32xf32>
    %166 = arith.addf %164, %165 : vector<8x32xf32>
    %167 = arith.truncf %166 : vector<8x32xf32> to vector<8x32xbf16>
    %c0_60 = arith.constant 0 : index
    %c0_61 = arith.constant 0 : index
    %168 = vector.load %arg12[%c0_60, %c0_61] : memref<32x128xbf16, #tpu.memory_space<vmem>>, vector<32x128xbf16>
    %cst_62 = arith.constant dense<0.000000e+00> : vector<8x128xf32>
    %169 = tpu.matmul %167, %168, %cst_62 {dimension_numbers = #tpu.dot_dimension_numbers<[1], [0], [0], [1], [0, 0, 1, 1], [], []>} : vector<8x32xbf16>, vector<32x128xbf16>, vector<8x128xf32> -> vector<8x128xf32>
    %c0_63 = arith.constant 0 : index
    %c0_64 = arith.constant 0 : index
    %170 = vector.load %arg13[%c0_63, %c0_64] : memref<1x128xf32, #tpu.memory_space<vmem>>, vector<1x128xf32>
    %171 = vector.broadcast %170 : vector<1x128xf32> to vector<8x128xf32>
    %172 = arith.addf %169, %171 : vector<8x128xf32>
    %cst_65 = arith.constant 5.000000e-01 : f32
    %173 = vector.broadcast %cst_65 : f32 to vector<8x128xf32>
    %174 = arith.mulf %173, %172 : vector<8x128xf32>
    %cst_66 = arith.constant 4.471500e-02 : f32
    %175 = vector.broadcast %cst_66 : f32 to vector<8x128xf32>
    %176 = arith.mulf %175, %172 : vector<8x128xf32>
    %177 = arith.mulf %176, %172 : vector<8x128xf32>
    %178 = arith.mulf %177, %172 : vector<8x128xf32>
    %179 = arith.addf %172, %178 : vector<8x128xf32>
    %cst_67 = arith.constant 0.797884583 : f32
    %180 = vector.broadcast %cst_67 : f32 to vector<8x128xf32>
    %181 = arith.mulf %180, %179 : vector<8x128xf32>
    %182 = math.tanh %181 : vector<8x128xf32>
    %cst_68 = arith.constant 1.000000e+00 : f32
    %183 = vector.broadcast %cst_68 : f32 to vector<8x128xf32>
    %184 = arith.addf %183, %182 : vector<8x128xf32>
    %185 = arith.mulf %174, %184 : vector<8x128xf32>
    %186 = arith.truncf %185 : vector<8x128xf32> to vector<8x128xbf16>
    %c0_69 = arith.constant 0 : index
    %c0_70 = arith.constant 0 : index
    %187 = vector.load %arg14[%c0_69, %c0_70] : memref<128x32xbf16, #tpu.memory_space<vmem>>, vector<128x32xbf16>
    %cst_71 = arith.constant dense<0.000000e+00> : vector<8x32xf32>
    %188 = tpu.matmul %186, %187, %cst_71 {dimension_numbers = #tpu.dot_dimension_numbers<[1], [0], [0], [1], [0, 0, 1, 1], [], []>} : vector<8x128xbf16>, vector<128x32xbf16>, vector<8x32xf32> -> vector<8x32xf32>
    %c0_72 = arith.constant 0 : index
    %c0_73 = arith.constant 0 : index
    %189 = vector.load %arg15[%c0_72, %c0_73] : memref<1x32xf32, #tpu.memory_space<vmem>>, vector<1x32xf32>
    %190 = vector.broadcast %189 : vector<1x32xf32> to vector<8x32xf32>
    %191 = arith.addf %188, %190 : vector<8x32xf32>
    %192 = arith.addf %142, %191 : vector<8x32xf32>
    %193 = arith.addf %192, %1 : vector<8x32xf32>
    %c0_74 = arith.constant 0 : index
    %c0_75 = arith.constant 0 : index
    %c0_76 = arith.constant 0 : index
    %194 = vector.load %arg16[%c0_74, %c0_75, %c0_76] : memref<1x8x32xf32, #tpu.memory_space<vmem>>, vector<1x8x32xf32>
    %195 = vector.shape_cast %194 : vector<1x8x32xf32> to vector<8x32xf32>
    %196 = vector.shape_cast %193 : vector<8x32xf32> to vector<1x8x32xf32>
    tpu.vector_store %arg16[%c0_74, %c0_75, %c0_76], %196 {strides = array<i32>} : memref<1x8x32xf32, #tpu.memory_space<vmem>>, vector<1x8x32xf32>,
    return
  }
  func.func @transform_0(%arg0: i32) -> (i32, i32, i32) {
    %c0_i32 = arith.constant 0 : i32
    %c0_i32_0 = arith.constant 0 : i32
    %c0_i32_1 = arith.constant 0 : i32
    return %arg0, %c0_i32, %c0_i32_0 : i32, i32, i32
  }
  func.func @transform_1(%arg0: i32) -> (i32, i32) {
    %c0_i32 = arith.constant 0 : i32
    %c0_i32_0 = arith.constant 0 : i32
    %c0_i32_1 = arith.constant 0 : i32
    return %c0_i32, %c0_i32_0 : i32, i32
  }
  func.func @transform_2(%arg0: i32) -> (i32, i32) {
    %c0_i32 = arith.constant 0 : i32
    %c0_i32_0 = arith.constant 0 : i32
    %c0_i32_1 = arith.constant 0 : i32
    return %c0_i32, %c0_i32_0 : i32, i32
  }
  func.func @transform_3(%arg0: i32) -> (i32, i32) {
    %c0_i32 = arith.constant 0 : i32
    %c0_i32_0 = arith.constant 0 : i32
    %c0_i32_1 = arith.constant 0 : i32
    return %c0_i32, %c0_i32_0 : i32, i32
  }
  func.func @transform_4(%arg0: i32) -> (i32, i32) {
    %c0_i32 = arith.constant 0 : i32
    %c0_i32_0 = arith.constant 0 : i32
    %c0_i32_1 = arith.constant 0 : i32
    return %c0_i32, %c0_i32_0 : i32, i32
  }
  func.func @transform_5(%arg0: i32) -> (i32, i32) {
    %c0_i32 = arith.constant 0 : i32
    %c0_i32_0 = arith.constant 0 : i32
    %c0_i32_1 = arith.constant 0 : i32
    return %c0_i32, %c0_i32_0 : i32, i32
  }
  func.func @transform_6(%arg0: i32) -> (i32, i32) {
    %c0_i32 = arith.constant 0 : i32
    %c0_i32_0 = arith.constant 0 : i32
    %c0_i32_1 = arith.constant 0 : i32
    return %c0_i32, %c0_i32_0 : i32, i32
  }
  func.func @transform_7(%arg0: i32) -> (i32, i32) {
    %c0_i32 = arith.constant 0 : i32
    %c0_i32_0 = arith.constant 0 : i32
    %c0_i32_1 = arith.constant 0 : i32
    return %c0_i32, %c0_i32_0 : i32, i32
  }
  func.func @transform_8(%arg0: i32) -> (i32, i32) {
    %c0_i32 = arith.constant 0 : i32
    %c0_i32_0 = arith.constant 0 : i32
    %c0_i32_1 = arith.constant 0 : i32
    return %c0_i32, %c0_i32_0 : i32, i32
  }
  func.func @transform_9(%arg0: i32) -> (i32, i32) {
    %c0_i32 = arith.constant 0 : i32
    %c0_i32_0 = arith.constant 0 : i32
    %c0_i32_1 = arith.constant 0 : i32
    return %c0_i32, %c0_i32_0 : i32, i32
  }
  func.func @transform_10(%arg0: i32) -> (i32, i32) {
    %c0_i32 = arith.constant 0 : i32
    %c0_i32_0 = arith.constant 0 : i32
    %c0_i32_1 = arith.constant 0 : i32
    return %c0_i32, %c0_i32_0 : i32, i32
  }
  func.func @transform_11(%arg0: i32) -> (i32, i32) {
    %c0_i32 = arith.constant 0 : i32
    %c0_i32_0 = arith.constant 0 : i32
    %c0_i32_1 = arith.constant 0 : i32
    return %c0_i32, %c0_i32_0 : i32, i32
  }
  func.func @transform_12(%arg0: i32) -> (i32, i32) {
    %c0_i32 = arith.constant 0 : i32
    %c0_i32_0 = arith.constant 0 : i32
    %c0_i32_1 = arith.constant 0 : i32
    return %c0_i32, %c0_i32_0 : i32, i32
  }
  func.func @transform_13(%arg0: i32) -> (i32, i32) {
    %c0_i32 = arith.constant 0 : i32
    %c0_i32_0 = arith.constant 0 : i32
    %c0_i32_1 = arith.constant 0 : i32
    return %c0_i32, %c0_i32_0 : i32, i32
  }
  func.func @transform_14(%arg0: i32) -> (i32, i32) {
    %c0_i32 = arith.constant 0 : i32
    %c0_i32_0 = arith.constant 0 : i32
    %c0_i32_1 = arith.constant 0 : i32
    return %c0_i32, %c0_i32_0 : i32, i32
  }
  func.func @transform_15(%arg0: i32) -> (i32, i32, i32) {
    %c0_i32 = arith.constant 0 : i32
    %c0_i32_0 = arith.constant 0 : i32
    %c0_i32_1 = arith.constant 0 : i32
    return %arg0, %c0_i32, %c0_i32_0 : i32, i32, i32
  }
}

</mosaic_0001>

<bundles_post_ra>
// kernel: tpu_custom_call.1
= control target key start
LH: loop header
LB: loop body
LE: loop exit
PB: predicated region body
PF: predicated region fallthrough
CT: control target
= control target key end

     0   :  { %s2275_s0 = inlined_call_operand.hbm [shape: f32[2,8,32], index: 0, kind: input, shape index: {}, may-alias: {0,15}]   ;;  %s2276_s1 = inlined_call_operand.vmem [shape: f32[8,32], index: 1, kind: input, shape index: {}]   ;;  %s2277_s2 = inlined_call_operand.vmem [shape: f32[8,32], index: 2, kind: input, shape index: {}]   ;;  %s2278_s3 = inlined_call_operand.vmem [shape: f32[1,32], index: 3, kind: input, shape index: {}]   ;;  %s2279_s4 = inlined_call_operand.vmem [shape: f32[1,32], index: 4, kind: input, shape index: {}]   ;;  %s2280_s5 = inlined_call_operand.vmem [shape: f32[1,32], index: 5, kind: input, shape index: {}]   ;;  %s2281_s6 = inlined_call_operand.vmem [shape: f32[1,32], index: 6, kind: input, shape index: {}]   ;;  %s2282_s7 = inlined_call_operand.vmem [shape: bf16[32,160], index: 7, kind: input, shape index: {}]   ;;  %s2283_s8 = inlined_call_operand.vmem [shape: f32[1,160], index: 8, kind: input, shape index: {}]   ;;  %s2284_s9 = inlined_call_operand.vmem [shape: bf16[32,32], index: 9, kind: input, shape index: {}]   ;;  %s2285_s10 = inlined_call_operand.vmem [shape: f32[1,32], index: 10, kind: input, shape index: {}]   ;;  %s2286_s11 = inlined_call_operand.vmem [shape: bf16[32,128], index: 11, kind: input, shape index: {}]   ;;  %s2287_s12 = inlined_call_operand.vmem [shape: f32[1,128], index: 12, kind: input, shape index: {}]   ;;  %s2288_s13 = inlined_call_operand.vmem [shape: bf16[128,32], index: 13, kind: input, shape index: {}]   ;;  %s2289_s14 = inlined_call_operand.vmem [shape: f32[1,32], index: 14, kind: input, shape index: {}]   ;;  %s2290_s15 = inlined_call_operand.hbm [shape: f32[2,8,32], index: 15, kind: output, shape index: {}, may-alias: {0,15}]  }
   0x1   :  { %2301 = sst [smem:[#allocation15_spill]] %s2289_s14 }
   0x2   :  { %2302 = sst [smem:[#allocation16_spill]] %s2290_s15 }
   0x3   :  { %20 = vsyncpa [#allocation4], 0 }
   0x4   :  { %22 = vsyncpa [#allocation4 + $0x1], 0 }
   0x5   :  { %23 = vsyncpa [#allocation5], 0 }
   0x6   :  { %25 = vsyncpa [#allocation5 + $0x1], 0  ;;  %s1938_s18 = smov 0   ;;  %s1940_s19 = smov 0  }
   0x7   :  { %s1942_s20 = smov 0   ;;  %s1944_s21 = smov 0  }
   0x8 LB: > { %2303 = sst [smem:[#allocation9_spill]] %s1824_s18  ;;  %s1959_s22 = sadd.s32 4294967295, %s1836_s21   ;;  %s1836_s21 = sphi %s1944_s21, %s2325_s21   ;;  %s1832_s20 = sphi %s1942_s20, %s2327_s20   ;;  %s1828_s19 = sphi %s1940_s19, %s2329_s19   ;;  %s1824_s18 = sphi %s1938_s18, %s2328_s18  }
   0x9   : > { %2304 = sst [smem:[#allocation10_spill]] %s1832_s20  ;;  %s1481_s23 = sadd.s32 4294967294, %s1836_s21  }
   0xa   : > { %s1963_s24 = sadd.s32 1, %s1836_s21   ;;  %s38_s25 = sadd.s32 1, %s1832_s20 }
   0xb   : > { %2305 = sst [smem:[#allocation11_spill]] %s1963_s24  ;;  %s35_s26 = ssub.s32 %s1836_s21, %s1963_s24 }
   0xc   : > { %p45_p0 = scmp.ne.s32.totalorder %s1832_s20, %s1828_s19  ;;  %p36_p1 = scmp.eq.s32.totalorder %s35_s26, 0 }
   0xd   : > { %p46_p2 = scmp.eq.s32.totalorder %s1836_s21, 0  ;;  %p51_p3 = scmp.ne.s32.totalorder %s1828_s19, %s1824_s18 }
   0xe   : > { %p52_p4 = scmp.eq.s32.totalorder %s1959_s22, 0  ;;  %p369_p7 = scmp.eq.s32.totalorder %s1959_s22, 1 }
   0xf   : > { %s1975_s27 = scalar_select %p36_p1, %s1832_s20, %s38_s25  }
  0x10   : > { %p1977_p5 = por %p46_p2, %p45_p0  ;;  %p1981_p6 = por %p52_p4, %p51_p3 }
  0x11   : > { %2306 = sst [smem:[#allocation12_spill]] %s1975_s27  ;;  %p375_p8 = scmp.eq.s32.totalorder %s1481_s23, 1 }
  0x12   : > { %s2308_s29 = scalar_select %p1981_p6, 1, 0 }
  0x13   : > { %p1654_p10 = scmp.lt.s32.totalorder %s1836_s21, 2  ;;  %p1988_p11 = por %p369_p7, %p45_p0 }
  0x14   : > { %p1992_p12 = por %p375_p8, %p51_p3  ;;  %s437_s17 = sand.u32 1, %s1832_s20  }
  0x15   : > { %s2309_s30 = scalar_select %p1988_p11, 1, 0 }
  0x16   : > { %s2311_s16 = scalar_select %p1992_p12, 1, 0 }
  0x17   : > { %2310 = sst [smem:[#allocation13_spill]] %s2309_s30  ;;  %s1485_s25 = sshll.u32 %s1836_s21, 7 }
  0x18   : > { %2312 = sst [smem:[#allocation14_spill]] %s2311_s16  ;;  %s1484_s26 = sshll.u32 %s437_s17, 3 }
  0x19   : > { %s2001_s18 = scalar_lea.hbm %s2275_s0, %s1485_s25  ;;  %s441_s23 = scalar_lea.vmem [#allocation3], %s1484_s26 }
  0x1a   : > { %s448_s15 = sshll.u32 %s441_s23, 4  ;;  %p2005_p13 = pnand %p1654_p10, %p1977_p5  ;;  %s2009_s15 = int_to_ptr.vmem [resolvable:$true] %s448_s15 }
  0x1b   : > { %s438_s20 = scalar_lea.sflag [#allocation4], %s437_s17  ;;  %s1744_s16 = scalar_lea.hbm %s2001_s18, 128 }
  0x1c   : > { %p1745_p2 = scmp.ne.s32.totalorder %s2001_s18, %s1744_s16  ;;  %p1746_p3 = pneg %p2005_p13 }
  0x1d   : > { %s1749_s28 = scalar_lea.hbm %s2275_s0, 256  ;;  %p1750_p5 = scmp.lt.s32.totalorder %s2001_s18, %s2275_s0 }
  0x1e   : > { %p1747_p4 = pnand %p1746_p3, %p1745_p2  ;;  %p1751_p8 = scmp.lt.s32.totalorder %s1749_s28, %s1744_s16 }
  0x20   : > { %p1748_p7 = pneg %p1747_p4  ;;  %p1752_p10 = por %p1751_p8, %p1750_p5 }
  0x22   : > { %p1753_p9 = pnand %p1752_p10, %p1748_p7 }
  0x24   : > { %1756 = shalt.err (!%p1753_p9)
}
  0x25   : > { %s1757_s17 = scalar_lea.vmem %s2009_s15, 128  ;;  %s1838_s23 = smov [#allocation3]  }
  0x26   : > { %p1758_p0 = scmp.ne.s32.totalorder %s2009_s15, %s1757_s17  ;;  %s1762_s14 = sshll.u32 %s1838_s23, 4  ;;  %s1763_s14 = int_to_ptr.vmem [resolvable:$false] %s1762_s14 }
  0x27   : > { %s1764_s24 = scalar_lea.vmem %s1763_s14, 256  ;;  %p1765_p4 = scmp.lt.s32.totalorder %s2009_s15, %s1763_s14 }
  0x28   : > { %p1760_p1 = pnand %p1758_p0, %p1746_p3  ;;  %p1766_p12 = scmp.lt.s32.totalorder %s1764_s24, %s1757_s17 }
  0x2a   : > { %p1761_p2 = pneg %p1760_p1  ;;  %p1767_p11 = por %p1766_p12, %p1765_p4 }
  0x2c   : > { %p1768_p6 = pnand %p1767_p11, %p1761_p2 }
  0x2e   : > { %1771 = shalt.err (!%p1768_p6)
}
  0x2f   : > { %1649 = dma.hbm_to_vmem [thread:$0]  (!%p2005_p13), %s2001_s18, 128, %s2009_s15, %s438_s20  }
  0x30   : > { %p2314_p9 = scmp.lt.s32.totalorder %s1836_s21, 3  ;;  %p2315_p7 = scmp.ge.s32.totalorder %s1836_s21, 1 }
  0x32   : > { %p454_p0 = pnand %p2315_p7, %p2314_p9 }
  0x33   : > { %s2036_s16 = sand.u32 (!%p454_p0), 1, %s1828_s19   ;;  %p2316_p6 = scmp.ne.s32.totalorder (!%p454_p0), %s2308_s29, 0 }
  0x34   : > { %457 = sbr.rel (%p454_p0) target bundleno = 1751 (0x6d7), region = 80  ;;  %s1487_s14 = sshll.u32 (!%p454_p0), %s2036_s16, 3 }
  0x35   : > { %s460_s27 = scalar_lea.sflag (!%p454_p0), [#allocation4], %s2036_s16  ;;  %s463_s30 = scalar_lea.vmem (!%p454_p0), [#allocation3], %s1487_s14 }
  0x39   : > { %1815 = dma.done.wait (%p2316_p6), %s460_s27, 128  }
  0x3a   : > { %1817 = vsyncadd (%p2316_p6), %s460_s27, 4294967168  ;;  %vm516_vm0 = vcmask 261120   ;;  %v2046_v0 = vld [vmem:[%s463_s30] sm:$0xff]  ;;  %v1839_v10 = vmov 0   ;;  %v512_v12 = vld [vmem:[%s2276_s1] sm:$0xff]  ;;  %s1840_s27 = smov 96   ;;  %v552_v24 = vlaneseq }
  0x3b   : > { %v517_v1 = vsel %vm516_vm0, %v2046_v0, 0.0  ;;  %v1706_v7 = vld [vmem:[%s2282_s7 + $0x14] ss:$8 sps:$4 sm:$0xff]   ;;  %v1708_v8 = vld [vmem:[%s2282_s7 + $0x10] ss:$8 sps:$4 sm:$0xff]   ;;  %617 = vmatprep.mubr.bf16.mxu0 %v1839_v10  ;;  %628 = vrot.lane.b32.xlu1 %v512_v12, %s1840_s27  ;;  %v513_v13 = vld [vmem:[%s2277_s2] sm:$0xff] }
  0x3c   : > { %518 = vadd.xlane.f32.xlu0 %v517_v1  ;;  %v1709_v9 = vld [vmem:[%s2282_s7 + $0x4] ss:$8 sps:$4 sm:$0xff]   ;;  %597 = vmatprep.subr.bf16.mxu0 %v1706_v7  ;;  %v1711_v11 = vld [vmem:[%s2282_s7] ss:$8 sps:$4 sm:$0xff]   ;;  %s1841_s18 = smov 32   ;;  %v2083_v25 = vshrl.u32 %v552_v24, 7 }
  0x3d   : > { %598 = vmatpush1.bf16.msra.mxu0 %v1708_v8  ;;  %v1489_v18 = vld [vmem:[%s2278_s3] ss:$0 sm:$0xff]  ;;  %v1842_v40 = vmov 0.0   ;;  %vm1843_vm1 = vmmov 0   ;;  %s1844_s23 = smov 72   ;;  %s1845_s24 = smov 88  }
  0x3e   : > { %599 = vmatprep.subr.bf16.mxu0 %v1709_v9  ;;  %v1490_v20 = vld [vmem:[%s2279_s4] ss:$0 sm:$0xff]  ;;  %v554_v26 = vsub.s32 0, %v2083_v25  ;;  %v558_v28 = vsub.s32 1, %v2083_v25  ;;  %1570 = vmatprep.subr.bf16.mxu1 %v1842_v40  ;;  %s1846_s30 = smov 120   ;;  %s1847_s15 = smov 80  }
  0x3f   : > { %638 = vrot.lane.b32.xlu1 %v513_v13, %s1841_s18  ;;  %v550_v27 = vld [vmem:[%s2283_s8] sm:$0x3]  ;;  %1572 = vmatprep.mubr.msk.bf16.mxu1 %vm1843_vm1, %v1842_v40  ;;  %s1849_s20 = smov 104   ;;  %s1850_s29 = smov 64   ;;  %vm659_vm2 = vcmask 64512   ;;  %vm723_vm3 = vcmask 1043456  }
  0x40   : > { %v555_v29 = vrot.slane %v550_v27, %v554_v26  ;;  %v559_v30 = vrot.slane %v550_v27, %v558_v28  ;;  %v651_v1 = vand.u32 127, %v552_v24  ;;  %s1852_s28 = smov 40   ;;  %s1853_s25 = smov 56   ;;  %vm886_vm5 = vcmask 130112  }
  0x41   : > { %600 = vmatpush1.bf16.msra.mxu0 %v1711_v11  ;;  %s1855_s17 = smov 16   ;;  %vm1003_vm6 = vcmask 195712   ;;  %vm1120_vm7 = vcmask 261312  }
  0x42   : > { %1558 = vmatprep.subr.bf16.mxu0 %v1842_v40  ;;  %vm652_vm4 = vcmp.ge.s32.totalorder %v2083_v25, %v651_v1 }
  0xad   : > { %v629_v33 = vpop.permute.xlu1 %628 }
  0xb1   : > { %v639_v41 = vpop.permute.xlu1 %638 }
  0xc5   : > { %v519_v2 = vpop.xlane.xlu0 %518 }
  0xc6   : > { %v521_v3 = vmul.f32 0.03125, %v519_v2 }
  0xc8   : > { %v522_v4 = vsub.f32 %v2046_v0, %v521_v3 }
  0xca   : > { %v523_v5 = vmul.f32 %v522_v4, %v522_v4 }
  0xcc   : > { %v524_v6 = vsel %vm516_vm0, %v523_v5, 0.0 }
  0xcd   : > { %525 = vadd.xlane.f32.xlu0 %v524_v6 }
 0x156   : > { %v526_v14 = vpop.xlane.xlu0 %525 }
 0x157   : > { %v527_v15 = vmul.f32 0.03125, %v526_v14 }
 0x159   : > { %v528_v16 = vadd.f32 1e-05, %v527_v15 }
 0x15b   : > { %1724 = vrsqrt.f32 %v528_v16 }
 0x168   : > { %v1725_v17 = vpop.eup %1724 }
 0x169   : > { %v2075_v19 = vmul.f32 %v1725_v17, %v522_v4 }
 0x16b   : > { %v537_v21 = vmul.f32 %v1489_v18, %v2075_v19 }
 0x16d   : > { %v544_v22 = vadd.f32 %v1490_v20, %v537_v21 }
 0x16f   : > { %v545_v23 = vpack.c.bf16 %v544_v22, %v544_v22 }
 0x171   : > { %1495 = vmatmul.mubr.msk.bf16.vlgmr.msra.gmra.mxu0 %vm516_vm0, %v545_v23 }
 0x172   : > { %1560 = vmatprep.mubr.msk.bf16.mxu0 %vm1843_vm1, %v1842_v40 }
 0x231   : > { %v619_v31 = vpop.f32.mrf.mxu0 }
 0x232   : > { %v620_v32 = vadd.f32 %v619_v31, %v555_v29 }
 0x233   : > { %v621_v34 = vpop.f32.mrf.mxu0 }
 0x234   : > { %v622_v35 = vadd.f32 %v621_v34, %v559_v30  ;;  %v631_v36 = vmul.f32 %v629_v33, %v620_v32  ;;  %v641_v42 = vmul.f32 %v639_v41, %v620_v32  ;;  %v626_v47 = vmul.f32 %v620_v32, %v513_v13 }
 0x235   : > { %v623_v37 = vpop.f32.mrf.mxu0  ;;  %v2099_v50 = vpack.c.bf16 %v620_v32, %v620_v32 }
 0x236   : > { %v642_v38 = vmul.f32 %v622_v35, %v512_v12  ;;  %633 = vrot.lane.b32.xlu1 %v631_v36, %s1841_s18 }
 0x237   : > { %v624_v39 = vpop.f32.mrf.mxu0 }
 0x238   : > { %644 = vrot.lane.b32.xlu0 %v642_v38, %s1841_s18  ;;  %s1848_s18 = smov 112  }
 0x2a8   : > { %v634_v46 = vpop.permute.xlu1 %633 }
 0x2a9   : > { %v636_v48 = vadd.f32 %v634_v46, %v626_v47 }
 0x2aa   : > { %v645_v43 = vpop.permute.xlu0 %644 }
 0x2ab   : > { %v647_v44 = vadd.f32 %v645_v43, %v641_v42  ;;  %v653_v49 = vpack.c.bf16 %v636_v48, %v636_v48 }
 0x2ad   : > { %v654_v45 = vpack.c.bf16 %v647_v44, %v647_v44 }
 0x2af   : > { %1007 = vrot.lane.b32.xlu0 %v654_v45, %s1844_s23  ;;  %657 = vrot.lane.b32.xlu1 %v654_v45, %s1840_s27  ;;  %s1851_s27 = smov 48   ;;  %s1856_s23 = smov 24  }
 0x2b3   : > { %773 = vrot.lane.b32.xlu1 %v654_v45, %s1845_s24  ;;  %s1524_s24 = sshll.u32 %s1959_s22, 7  ;;  %s1857_s22 = smov [#allocation6]  }
 0x2b7   : > { %771 = vrot.lane.b32.xlu1 %v653_v49, %s1846_s30  ;;  %s509_s30 = scalar_lea.vmem [#allocation6], %s1487_s14  ;;  %s1776_s14 = sshll.u32 %s1857_s22, 4  ;;  %s1777_s14 = int_to_ptr.vmem [resolvable:$false] %s1776_s14 }
 0x2b8   : > { %s1778_s26 = scalar_lea.vmem %s1777_s14, 256 }
 0x2bb   : > { %890 = vrot.lane.b32.xlu1 %v654_v45, %s1847_s15  ;;  %s1411_s15 = sshll.u32 %s509_s30, 4  ;;  %s1412_s15 = int_to_ptr.vmem [resolvable:$true] %s1411_s15 }
 0x2bc   : > { %p1779_p3 = scmp.lt.s32.totalorder %s1412_s15, %s1777_s14 }
 0x2bf   : > { %888 = vrot.lane.b32.xlu1 %v653_v49, %s1848_s18 }
 0x2c3   : > { %1005 = vrot.lane.b32.xlu1 %v653_v49, %s1849_s20 }
 0x2c7   : > { %718 = vrot.lane.b32.xlu1 %v2099_v50, %s1850_s29  ;;  %s1854_s29 = smov 8  }
 0x321   : > { %v658_v51 = vpop.permute.xlu1 %657  ;;  %v1008_v59 = vpop.permute.xlu0 %1007 }
 0x322   : > { %v664_v52 = vsel %vm659_vm2, %v658_v51, 0  ;;  %v1013_v61 = vsel %vm659_vm2, %v1008_v59, 0 }
 0x323   : > { %1559 = vmatpush3.bf16.xpose.msra.mxu0 %v664_v52 }
 0x324   : > { %1564 = vmatprep.subr.bf16.mxu0 %v1842_v40 }
 0x325   : > { %v774_v53 = vpop.permute.xlu1 %773 }
 0x326   : > { %v779_v54 = vsel %vm659_vm2, %v774_v53, 0 }
 0x327   : > { %1571 = vmatpush3.bf16.xpose.msra.mxu1 %v779_v54 }
 0x328   : > { %1582 = vmatprep.subr.bf16.mxu1 %v1842_v40 }
 0x329   : > { %v772_v55 = vpop.permute.xlu1 %771 }
 0x32a   : > { %1561 = vmatmul.mubr.msk.bf16.vlgmr.msra.gmra.mxu0 %vm659_vm2, %v653_v49 }
 0x32b   : > { %1566 = vmatprep.mubr.msk.bf16.mxu0 %vm1843_vm1, %v1842_v40 }
 0x32d   : > { %v891_v56 = vpop.permute.xlu1 %890 }
 0x32e   : > { %v896_v57 = vsel %vm659_vm2, %v891_v56, 0  ;;  %1573 = vmatmul.mubr.msk.bf16.vlgmr.msra.gmra.mxu1 %vm659_vm2, %v772_v55  ;;  %v1508_v56 = vld [vmem:[%s2280_s5] ss:$0 sm:$0xff] }
 0x32f   : > { %1583 = vmatpush3.bf16.xpose.msra.mxu1 %v896_v57  ;;  %1584 = vmatprep.mubr.msk.bf16.mxu1 %vm1843_vm1, %v1842_v40  ;;  %v1712_v57 = vld [vmem:[%s2286_s11 + $0x8] sm:$0xff]  }
 0x330   : > { %1594 = vmatprep.subr.bf16.mxu1 %v1842_v40 }
 0x331   : > { %v889_v58 = vpop.permute.xlu1 %888 }
 0x335   : > { %v1006_v60 = vpop.permute.xlu1 %1005 }
 0x336   : > { %1585 = vmatmul.mubr.msk.bf16.vlgmr.msra.gmra.mxu1 %vm659_vm2, %v889_v58  ;;  %v1198_v58 = vmul.f32 %v1508_v56, %v2075_v19  ;;  %v1722_v56 = vld [vmem:[%s2288_s13 + $0x8] sm:$0xff]  }
 0x337   : > { %1595 = vmatpush3.bf16.xpose.msra.mxu1 %v1013_v61  ;;  %1596 = vmatprep.mubr.msk.bf16.mxu1 %vm1843_vm1, %v1842_v40  ;;  %v1509_v61 = vld [vmem:[%s2281_s6] ss:$0 sm:$0xff] }
 0x338   : > { %1606 = vmatprep.subr.bf16.mxu1 %v1842_v40  ;;  %v1205_v19 = vadd.f32 %v1509_v61, %v1198_v58 }
 0x339   : > { %v719_v62 = vpop.permute.xlu1 %718 }
 0x33a   : > { %v725_v63 = vsel %vm723_vm3, %v719_v62, 0  ;;  %v1713_v62 = vld [vmem:[%s2286_s11] sm:$0xff]  }
 0x33b   : > { %1565 = vmatpush3.bf16.msra.mxu0 %v725_v63  ;;  %v1206_v63 = vpack.c.bf16 %v1205_v19, %v1205_v19 }
 0x33c   : > { %1576 = vmatprep.subr.bf16.mxu0 %v1842_v40 }
 0x33e   : > { %1597 = vmatmul.mubr.msk.bf16.vlgmr.msra.gmra.mxu1 %vm659_vm2, %v1006_v60 }
 0x33f   : > { %1610 = vmatprep.mubr.msk.bf16.mxu1 %vm1843_vm1, %v1842_v40 }
 0x3ea   : > { %v700_v2 = vpop.f32.mrf.mxu0 }
 0x3eb   : > { %v706_v3 = vsel %vm652_vm4, %v700_v2, -1e+30 }
 0x3ec   : > { %v1562_v4 = vpop.f32.mrf.mxu0  ;;  %v707_v5 = vsel %vm659_vm2, %v706_v3, -inf }
 0x3ed   : > { %708 = vmax.xlane.f32.xlu0 %v707_v5 }
 0x3ee   : > { %v703_v6 = vpop.f32.mrf.mxu0  ;;  %v815_v7 = vpop.f32.mrf.mxu1 }
 0x3ef   : > { %v821_v8 = vsel %vm652_vm4, %v815_v7, -1e+30 }
 0x3f0   : > { %v1563_v9 = vpop.f32.mrf.mxu0  ;;  %v1574_v10 = vpop.f32.mrf.mxu1  ;;  %v822_v11 = vsel %vm659_vm2, %v821_v8, -inf }
 0x3f1   : > { %823 = vmax.xlane.f32.xlu1 %v822_v11 }
 0x3f2   : > { %v818_v12 = vpop.f32.mrf.mxu1 }
 0x3f4   : > { %v1575_v13 = vpop.f32.mrf.mxu1 }
 0x3f6   : > { %v932_v14 = vpop.f32.mrf.mxu1 }
 0x3f7   : > { %v938_v15 = vsel %vm652_vm4, %v932_v14, -1e+30 }
 0x3f8   : > { %v1586_v16 = vpop.f32.mrf.mxu1  ;;  %v939_v17 = vsel %vm659_vm2, %v938_v15, -inf }
 0x3f9   : > { %940 = vmax.xlane.f32.xlu0 %v939_v17  ;;  %v1714_v17 = vld [vmem:[%s2284_s9 + $0x8] sm:$0xff]  }
 0x3fa   : > { %v935_v18 = vpop.f32.mrf.mxu1  ;;  %1607 = vmatpush3.bf16.msra.mxu1 %v1714_v17 }
 0x3fb   : > { %1608 = vmatprep.subr.bf16.mxu1 %v1842_v40 }
 0x3fc   : > { %v1587_v20 = vpop.f32.mrf.mxu1 }
 0x3fe   : > { %v1049_v21 = vpop.f32.mrf.mxu1 }
 0x3ff   : > { %v1055_v22 = vsel %vm652_vm4, %v1049_v21, -1e+30  ;;  %v1715_v21 = vld [vmem:[%s2284_s9] sm:$0xff]  }
 0x400   : > { %v1598_v23 = vpop.f32.mrf.mxu1  ;;  %v1056_v24 = vsel %vm659_vm2, %v1055_v22, -inf  ;;  %1609 = vmatpush3.bf16.msra.mxu1 %v1715_v21 }
 0x401   : > { %1057 = vmax.xlane.f32.xlu0 %v1056_v24  ;;  %1622 = vmatprep.subr.bf16.mxu1 %v1842_v40 }
 0x402   : > { %949 = vrot.lane.b32.xlu1 %v2099_v50, %s1851_s27  ;;  %v1052_v26 = vpop.f32.mrf.mxu1 }
 0x404   : > { %v1599_v27 = vpop.f32.mrf.mxu1 }
 0x406   : > { %1066 = vrot.lane.b32.xlu1 %v2099_v50, %s1852_s28  ;;  %s1398_s28 = scalar_lea.sflag [#allocation5], %s2036_s16 }
 0x417   : > { %832 = vrot.lane.b32.xlu0 %v2099_v50, %s1853_s25  ;;  %s1772_s25 = scalar_lea.vmem %s1412_s15, 128 }
 0x418   : > { %p1773_p11 = scmp.ne.s32.totalorder %s1412_s15, %s1772_s25  ;;  %p1780_p5 = scmp.lt.s32.totalorder %s1778_s26, %s1772_s25 }
 0x41a   : > { %p1781_p8 = por %p1780_p5, %p1779_p3 }
 0x476   : > { %v709_v28 = vpop.xlane.xlu0 %708 }
 0x477   : > { %v710_v29 = vsub.f32 %v706_v3, %v709_v28 }
 0x479   : > { %v711_v30 = vmul.f32 1.442695, %v710_v29 }
 0x47a   : > { %v824_v25 = vpop.xlane.xlu1 %823 }
 0x47b   : > { %1726 = vpow2.f32 %v711_v30  ;;  %v825_v31 = vsub.f32 %v821_v8, %v824_v25 }
 0x47d   : > { %v826_v32 = vmul.f32 1.442695, %v825_v31 }
 0x47e   : > { %v950_v46 = vpop.permute.xlu1 %949 }
 0x47f   : > { %1728 = vpow2.f32 %v826_v32  ;;  %v955_v48 = vsel %vm723_vm3, %v950_v46, 0  ;;  %v1716_v46 = vld [vmem:[%s2288_s13 + $0x38] sm:$0xff]  }
 0x482   : > { %v941_v33 = vpop.xlane.xlu0 %940  ;;  %v1067_v51 = vpop.permute.xlu1 %1066 }
 0x483   : > { %v942_v34 = vsub.f32 %v938_v15, %v941_v33  ;;  %v1072_v53 = vsel %vm723_vm3, %v1067_v51, 0  ;;  %v1718_v51 = vld [vmem:[%s2288_s13 + $0x28] sm:$0xff]  }
 0x485   : > { %v943_v35 = vmul.f32 1.442695, %v942_v34 }
 0x487   : > { %1730 = vpow2.f32 %v943_v35 }
 0x488   : > { %v1727_v36 = vpop.eup %1726 }
 0x489   : > { %v716_v37 = vpack.c.bf16 %v1727_v36, %v1727_v36  ;;  %v713_v59 = vsel %vm659_vm2, %v1727_v36, 0.0 }
 0x48a   : > { %v1058_v38 = vpop.xlane.xlu0 %1057 }
 0x48b   : > { %v1059_v39 = vsub.f32 %v1055_v22, %v1058_v38  ;;  %1567 = vmatmul.mubr.msk.bf16.vlgmr.msra.gmra.mxu0 %vm659_vm2, %v716_v37  ;;  %v1510_v37 = vld [vmem:[%s2287_s12] ss:$0 sm:$0xff] }
 0x48c   : > { %v1729_v41 = vpop.eup %1728  ;;  %1578 = vmatprep.mubr.msk.bf16.mxu0 %vm1843_vm1, %v1842_v40 }
 0x48d   : > { %v1060_v42 = vmul.f32 1.442695, %v1059_v39  ;;  %v828_v43 = vsel %vm659_vm2, %v1729_v41, 0.0  ;;  %v831_v47 = vpack.c.bf16 %v1729_v41, %v1729_v41 }
 0x48e   : > { %829 = vadd.xlane.f32.xlu0 %v828_v43  ;;  %v833_v44 = vpop.permute.xlu0 %832 }
 0x48f   : > { %1732 = vpow2.f32 %v1060_v42  ;;  %v838_v45 = vsel %vm723_vm3, %v833_v44, 0 }
 0x490   : > { %1577 = vmatpush3.bf16.msra.mxu0 %v838_v45 }
 0x491   : > { %1588 = vmatprep.subr.bf16.mxu0 %v1842_v40 }
 0x493   : > { %1579 = vmatmul.mubr.msk.bf16.vlgmr.msra.gmra.mxu0 %vm659_vm2, %v831_v47 }
 0x494   : > { %v1731_v49 = vpop.eup %1730  ;;  %1589 = vmatpush3.bf16.msra.mxu0 %v955_v48  ;;  %1590 = vmatprep.mubr.msk.bf16.mxu0 %vm1843_vm1, %v1842_v40 }
 0x495   : > { %v945_v50 = vsel %vm659_vm2, %v1731_v49, 0.0  ;;  %1600 = vmatprep.subr.bf16.mxu0 %v1842_v40  ;;  %v948_v52 = vpack.c.bf16 %v1731_v49, %v1731_v49  ;;  %v1717_v49 = vld [vmem:[%s2288_s13 + $0x30] sm:$0xff]  }
 0x496   : > { %946 = vadd.xlane.f32.xlu1 %v945_v50 }
 0x49b   : > { %1591 = vmatmul.mubr.msk.bf16.vlgmr.msra.gmra.mxu0 %vm659_vm2, %v948_v52  ;;  %v1719_v52 = vld [vmem:[%s2288_s13 + $0x20] sm:$0xff]  }
 0x49c   : > { %v1733_v54 = vpop.eup %1732  ;;  %1601 = vmatpush3.bf16.msra.mxu0 %v1072_v53  ;;  %1602 = vmatprep.mubr.msk.bf16.mxu0 %vm1843_vm1, %v1842_v40  ;;  %v1720_v53 = vld [vmem:[%s2288_s13 + $0x18] sm:$0xff]  }
 0x49d   : > { %v1062_v55 = vsel %vm659_vm2, %v1733_v54, 0.0  ;;  %1614 = vmatprep.subr.bf16.mxu0 %v1842_v40  ;;  %v1065_v60 = vpack.c.bf16 %v1733_v54, %v1733_v54  ;;  %v1721_v54 = vld [vmem:[%s2288_s13 + $0x10] sm:$0xff]  }
 0x49e   : > { %1063 = vadd.xlane.f32.xlu0 %v1062_v55 }
 0x4a2   : > { %714 = vadd.xlane.f32.xlu0 %v713_v59  ;;  %v1723_v59 = vld [vmem:[%s2288_s13] sm:$0xff]  }
 0x4a3   : > { %1603 = vmatmul.mubr.msk.bf16.vlgmr.msra.gmra.mxu0 %vm659_vm2, %v1065_v60 }
 0x4a4   : > { %1615 = vmatpush3.bf16.msra.mxu0 %v1712_v57  ;;  %1618 = vmatprep.mubr.msk.bf16.mxu0 %vm1843_vm1, %v1842_v40 }
 0x4a5   : > { %1616 = vmatprep.subr.bf16.mxu0 %v1842_v40 }
 0x4a8   : > { %1617 = vmatpush3.bf16.msra.mxu0 %v1713_v62 }
 0x4ab   : > { %1619 = vmatmul.mubr.msk.bf16.vlgmr.msra.gmra.mxu0 %vm516_vm0, %v1206_v63 }
 0x517   : > { %v830_v1 = vpop.xlane.xlu0 %829 }
 0x51f   : > { %v947_v5 = vpop.xlane.xlu1 %946 }
 0x527   : > { %v1064_v2 = vpop.xlane.xlu0 %1063 }
 0x52b   : > { %v715_v3 = vpop.xlane.xlu0 %714 }
 0x52c   : > { %1734 = vrcp.f32 %v715_v3 }
 0x52d   : > { %1736 = vrcp.f32 %v830_v1 }
 0x52e   : > { %1738 = vrcp.f32 %v947_v5 }
 0x52f   : > { %1740 = vrcp.f32 %v1064_v2  ;;  %v1504_v2 = vld [vmem:[%s2285_s10] ss:$0 sm:$0xff] }
 0x539   : > { %v1735_v4 = vpop.eup %1734 }
 0x53a   : > { %v1737_v11 = vpop.eup %1736 }
 0x53b   : > { %v1739_v18 = vpop.eup %1738 }
 0x53c   : > { %v1741_v27 = vpop.eup %1740 }
 0x54b   : > { %v761_v6 = vpop.f32.mrf.mxu0 }
 0x54c   : > { %v768_v7 = vmul.f32 %v1735_v4, %v761_v6 }
 0x54d   : > { %v1568_v8 = vpop.f32.mrf.mxu0 }
 0x54e   : > { %769 = vst.msk [vmem:[#allocation2] sm:$0xff] %vm659_vm2, %v768_v7 }
 0x54f   : > { %v764_v9 = vpop.f32.mrf.mxu0 }
 0x551   : > { %v1569_v10 = vpop.f32.mrf.mxu0 }
 0x553   : > { %v874_v12 = vpop.f32.mrf.mxu0 }
 0x554   : > { %v881_v13 = vmul.f32 %v1737_v11, %v874_v12 }
 0x555   : > { %v1580_v14 = vpop.f32.mrf.mxu0 }
 0x556   : > { %883 = vrot.lane.b32.xlu1 %v881_v13, %s1854_s29  ;;  %s2319_s29 = sld [smem:[#allocation16_spill]] }
 0x557   : > { %v877_v15 = vpop.f32.mrf.mxu0 }
 0x559   : > { %v1581_v16 = vpop.f32.mrf.mxu0 }
 0x55b   : > { %v991_v20 = vpop.f32.mrf.mxu0 }
 0x55c   : > { %v998_v22 = vmul.f32 %v1739_v18, %v991_v20  ;;  %s2237_s27 = scalar_lea.hbm %s2319_s29, %s1524_s24 }
 0x55d   : > { %v1592_v23 = vpop.f32.mrf.mxu0 }
 0x55e   : > { %1000 = vrot.lane.b32.xlu0 %v998_v22, %s1855_s17  ;;  %s2317_s17 = sld [smem:[#allocation15_spill]] }
 0x55f   : > { %v994_v24 = vpop.f32.mrf.mxu0 }
 0x561   : > { %v1593_v26 = vpop.f32.mrf.mxu0 }
 0x563   : > { %v1108_v28 = vpop.f32.mrf.mxu0 }
 0x564   : > { %v1115_v29 = vmul.f32 %v1741_v27, %v1108_v28  ;;  %v1514_v3 = vld [vmem:[%s2317_s17] ss:$0 sm:$0xff] }
 0x565   : > { %v1604_v30 = vpop.f32.mrf.mxu0 }
 0x566   : > { %1117 = vrot.lane.b32.xlu1 %v1115_v29, %s1856_s23  ;;  %s2318_s23 = sld [smem:[#allocation13_spill]] }
 0x567   : > { %v1111_v25 = vpop.f32.mrf.mxu0 }
 0x569   : > { %v1605_v31 = vpop.f32.mrf.mxu0 }
 0x56b   : > { %v1267_v32 = vpop.f32.mrf.mxu0 }
 0x56c   : > { %v1268_v39 = vadd.f32 %v1510_v37, %v1267_v32  ;;  %p2320_p12 = scmp.ne.s32.totalorder %s2318_s23, 0 }
 0x56d   : > { %v1620_v33 = vpop.f32.mrf.mxu0 }
 0x56e   : > { %v1274_v41 = vmul.f32 0.044715, %v1268_v39  ;;  %v1273_v58 = vmul.f32 0.5, %v1268_v39  ;;  %p1774_p13 = pnand %p1773_p11, %p2320_p12 }
 0x56f   : > { %v1270_v34 = vpop.f32.mrf.mxu0 }
 0x570   : > { %v1275_v43 = vmul.f32 %v1274_v41, %v1268_v39  ;;  %p1775_p1 = pneg %p1774_p13 }
 0x571   : > { %v1621_v35 = vpop.f32.mrf.mxu0 }
 0x572   : > { %v1276_v44 = vmul.f32 %v1275_v43, %v1268_v39  ;;  %p1782_p10 = pnand %p1781_p8, %p1775_p1 }
 0x574   : > { %v1277_v47 = vadd.f32 %v1276_v44, %v1268_v39 }
 0x576   : > { %v1278_v50 = vmul.f32 0.7978846, %v1277_v47 }
 0x578   : > { %1742 = vtanh.f32 %v1278_v50 }
 0x585   : > { %v1743_v55 = vpop.eup %1742 }
 0x586   : > { %v1280_v57 = vadd.f32 1.0, %v1743_v55 }
 0x588   : > { %v1281_v60 = vmul.f32 %v1280_v57, %v1273_v58 }
 0x58a   : > { %v1282_v61 = vpack.c.bf16 %v1281_v60, %v1281_v60 }
 0x5c8   : > { %v884_v36 = vpop.permute.xlu1 %883 }
 0x5c9   : > { %887 = vst.msk [vmem:[#allocation2] sm:$0xff] %vm886_vm5, %v884_v36 }
 0x5d0   : > { %v1001_v38 = vpop.permute.xlu0 %1000 }
 0x5d1   : > { %1004 = vst.msk [vmem:[#allocation2] sm:$0xff] %vm1003_vm6, %v1001_v38 }
 0x5d8   : > { %v1118_v42 = vpop.permute.xlu1 %1117 }
 0x5d9   : > { %1121 = vst.msk [vmem:[#allocation2] sm:$0xff] %vm1120_vm7, %v1118_v42 }
 0x5e0   : > { %v1122_v45 = vld [vmem:[#allocation2] sm:$0xff] }
 0x5e1   : > { %v1123_v48 = vpack.c.bf16 %v1122_v45, %v1122_v45 }
 0x5e3   : > { %1611 = vmatmul.mubr.msk.bf16.vlgmr.msra.gmra.mxu1 %vm516_vm0, %v1123_v48 }
 0x5e4   : > { %1623 = vmatpush3.bf16.msra.mxu1 %v1716_v46  ;;  %1638 = vmatprep.mubr.msk.bf16.mxu1 %vm1843_vm1, %v1842_v40 }
 0x5e5   : > { %1624 = vmatprep.subr.bf16.mxu1 %v1842_v40 }
 0x5e8   : > { %1625 = vmatpush3.bf16.msra.mxu1 %v1717_v49 }
 0x5e9   : > { %1626 = vmatprep.subr.bf16.mxu1 %v1842_v40 }
 0x5ec   : > { %1627 = vmatpush3.bf16.msra.mxu1 %v1718_v51 }
 0x5ed   : > { %1628 = vmatprep.subr.bf16.mxu1 %v1842_v40 }
 0x5f0   : > { %1629 = vmatpush3.bf16.msra.mxu1 %v1719_v52 }
 0x5f1   : > { %1630 = vmatprep.subr.bf16.mxu1 %v1842_v40 }
 0x5f4   : > { %1631 = vmatpush3.bf16.msra.mxu1 %v1720_v53 }
 0x5f5   : > { %1632 = vmatprep.subr.bf16.mxu1 %v1842_v40 }
 0x5f8   : > { %1633 = vmatpush3.bf16.msra.mxu1 %v1721_v54 }
 0x5f9   : > { %1634 = vmatprep.subr.bf16.mxu1 %v1842_v40 }
 0x5fc   : > { %1635 = vmatpush3.bf16.msra.mxu1 %v1722_v56 }
 0x5fd   : > { %1636 = vmatprep.subr.bf16.mxu1 %v1842_v40 }
 0x600   : > { %1637 = vmatpush3.bf16.msra.mxu1 %v1723_v59 }
 0x603   : > { %1639 = vmatmul.mubr.bf16.vlgmr.msra.gmra.mxu1 %v1282_v61 }
 0x6a3   : > { %v1184_v62 = vpop.f32.mrf.mxu1 }
 0x6a4   : > { %v1185_v40 = vadd.f32 %v1504_v2, %v1184_v62 }
 0x6a5   : > { %v1612_v19 = vpop.f32.mrf.mxu1 }
 0x6a7   : > { %v1187_v63 = vpop.f32.mrf.mxu1 }
 0x6a9   : > { %v1613_v1 = vpop.f32.mrf.mxu1 }
 0x6c3   : > { %v1388_v4 = vpop.f32.mrf.mxu1 }
 0x6c4   : > { %v1389_v5 = vadd.f32 %v1514_v3, %v1388_v4 }
 0x6c5   : > { %v1640_v6 = vpop.f32.mrf.mxu1 }
 0x6c6   : > { %v1394_v7 = vadd.f32 %v1389_v5, %v1185_v40 }
 0x6c7   : > { %v1391_v8 = vpop.f32.mrf.mxu1 }
 0x6c8   : > { %v1395_v9 = vadd.f32 %v1394_v7, %v2046_v0 }
 0x6c9   : > { %v1641_v10 = vpop.f32.mrf.mxu1 }
 0x6ca   : > { %1396 = vst.msk [vmem:[%s509_s30] sm:$0xff] %vm516_vm0, %v1395_v9 }
 0x6cb   : > { %1785 = shalt.err (!%p1782_p10)
}
 0x6cc   : > { %s1786_s17 = scalar_lea.hbm %s2237_s27, 128  ;;  %s1790_s30 = scalar_lea.hbm %s2319_s29, 256 }
 0x6cd   : > { %p1787_p2 = scmp.ne.s32.totalorder %s2237_s27, %s1786_s17  ;;  %p1791_p7 = scmp.lt.s32.totalorder %s2237_s27, %s2319_s29 }
 0x6ce   : > { %p1792_p0 = scmp.lt.s32.totalorder %s1790_s30, %s1786_s17 }
 0x6cf   : > { %p1788_p4 = pnand %p1787_p2, %p2320_p12 }
 0x6d0   : > { %p1793_p6 = por %p1792_p0, %p1791_p7 }
 0x6d1   : > { %p1789_p9 = pneg %p1788_p4 }
 0x6d3   : > { %p1794_p11 = pnand %p1793_p6, %p1789_p9 }
 0x6d5   : > { %1797 = shalt.err (!%p1794_p11)
}
 0x6d6   : > { %1644 = dma.vmem_to_hbm [thread:$0]  (%p2320_p12), %s1412_s15, 128, %s2237_s27, %s1398_s28  }
 0x6d7 PF: > { %s2321_s25 = sld [smem:[#allocation9_spill]]  ;;  %p2324_p1 = scmp.ge.s32.totalorder %s1836_s21, 2 }
 0x6d8   : > { %s2322_s22 = sld [smem:[#allocation14_spill]] }
 0x6dd   : > { %s1423_s14 = sand.u32 1, %s2321_s25  }
 0x6de   : > { %p2323_p13 = scmp.ne.s32.totalorder %s2322_s22, 0  ;;  %s1424_s26 = scalar_lea.sflag [#allocation5], %s1423_s14 }
 0x6e0   : > { %p1651_p3 = pnand %p2324_p1, %p2323_p13 }
 0x6e2   : > { %p1652_p5 = pneg %p1651_p3 }
 0x6e4   : > { %1819 = dma.done.wait (%p1652_p5), %s1424_s26, 128  }
 0x6e5   : > { %1821 = vsyncadd (%p1652_p5), %s1424_s26, 4294967168  ;;  %s2325_s21 = sld [smem:[#allocation11_spill]]  ;;  %s2328_s18 = smov %s1828_s19 }
 0x6e6   : > { %s2326_s17 = sld [smem:[#allocation10_spill]] }
 0x6e7   : > { %s2327_s20 = sld [smem:[#allocation12_spill]] }
 0x6eb   : > { %p28_p8 = scmp.ge.s32.totalorder %s2325_s21, 4  }
 0x6ec   : > { %s2329_s19 = smov %s2326_s17 }
 0x6ed   :  { %30 = sbr.rel (!%p28_p8) target bundleno = 8 (0x8), region = 125 }
 0x6f2   :  { %1429 = vsyncpa [#allocation4], 1 }
 0x6f3   :  { %1431 = vsyncpa [#allocation4 + $0x1], 1 }
 0x6f4   :  { %1432 = vsyncpa [#allocation5], 1 }
 0x6f5   :  { %1434 = vsyncpa [#allocation5 + $0x1], 1 }

// kernel: tpu_custom_call.1
= control target key start
LH: loop header
LB: loop body
LE: loop exit
PB: predicated region body
PF: predicated region fallthrough
CT: control target
= control target key end

     0   :  { %s2275_s0 = inlined_call_operand.hbm [shape: f32[2,8,32], index: 0, kind: input, shape index: {}, may-alias: {0,15}]   ;;  %s2276_s1 = inlined_call_operand.vmem [shape: f32[8,32], index: 1, kind: input, shape index: {}]   ;;  %s2277_s2 = inlined_call_operand.vmem [shape: f32[8,32], index: 2, kind: input, shape index: {}]   ;;  %s2278_s3 = inlined_call_operand.vmem [shape: f32[1,32], index: 3, kind: input, shape index: {}]   ;;  %s2279_s4 = inlined_call_operand.vmem [shape: f32[1,32], index: 4, kind: input, shape index: {}]   ;;  %s2280_s5 = inlined_call_operand.vmem [shape: f32[1,32], index: 5, kind: input, shape index: {}]   ;;  %s2281_s6 = inlined_call_operand.vmem [shape: f32[1,32], index: 6, kind: input, shape index: {}]   ;;  %s2282_s7 = inlined_call_operand.vmem [shape: bf16[32,160], index: 7, kind: input, shape index: {}]   ;;  %s2283_s8 = inlined_call_operand.vmem [shape: f32[1,160], index: 8, kind: input, shape index: {}]   ;;  %s2284_s9 = inlined_call_operand.vmem [shape: bf16[32,32], index: 9, kind: input, shape index: {}]   ;;  %s2285_s10 = inlined_call_operand.vmem [shape: f32[1,32], index: 10, kind: input, shape index: {}]   ;;  %s2286_s11 = inlined_call_operand.vmem [shape: bf16[32,128], index: 11, kind: input, shape index: {}]   ;;  %s2287_s12 = inlined_call_operand.vmem [shape: f32[1,128], index: 12, kind: input, shape index: {}]   ;;  %s2288_s13 = inlined_call_operand.vmem [shape: bf16[128,32], index: 13, kind: input, shape index: {}]   ;;  %s2289_s14 = inlined_call_operand.vmem [shape: f32[1,32], index: 14, kind: input, shape index: {}]   ;;  %s2290_s15 = inlined_call_operand.hbm [shape: f32[2,8,32], index: 15, kind: output, shape index: {}, may-alias: {0,15}]  }
   0x1   :  { %2301 = sst [smem:[#allocation15_spill]] %s2289_s14 }
   0x2   :  { %2302 = sst [smem:[#allocation16_spill]] %s2290_s15 }
   0x3   :  { %20 = vsyncpa [#allocation4], 0 }
   0x4   :  { %22 = vsyncpa [#allocation4 + $0x1], 0 }
   0x5   :  { %23 = vsyncpa [#allocation5], 0 }
   0x6   :  { %25 = vsyncpa [#allocation5 + $0x1], 0  ;;  %s1938_s18 = smov 0   ;;  %s1940_s19 = smov 0  }
   0x7   :  { %s1942_s20 = smov 0   ;;  %s1944_s21 = smov 0  }
   0x8 LB: > { %2303 = sst [smem:[#allocation9_spill]] %s1824_s18  ;;  %s1959_s22 = sadd.s32 4294967295, %s1836_s21   ;;  %s1836_s21 = sphi %s1944_s21, %s2325_s21   ;;  %s1832_s20 = sphi %s1942_s20, %s2327_s20   ;;  %s1828_s19 = sphi %s1940_s19, %s2329_s19   ;;  %s1824_s18 = sphi %s1938_s18, %s2328_s18  }
   0x9   : > { %2304 = sst [smem:[#allocation10_spill]] %s1832_s20  ;;  %s1481_s23 = sadd.s32 4294967294, %s1836_s21  }
   0xa   : > { %s1963_s24 = sadd.s32 1, %s1836_s21   ;;  %s38_s25 = sadd.s32 1, %s1832_s20 }
   0xb   : > { %2305 = sst [smem:[#allocation11_spill]] %s1963_s24  ;;  %s35_s26 = ssub.s32 %s1836_s21, %s1963_s24 }
   0xc   : > { %p45_p0 = scmp.ne.s32.totalorder %s1832_s20, %s1828_s19  ;;  %p36_p1 = scmp.eq.s32.totalorder %s35_s26, 0 }
   0xd   : > { %p46_p2 = scmp.eq.s32.totalorder %s1836_s21, 0  ;;  %p51_p3 = scmp.ne.s32.totalorder %s1828_s19, %s1824_s18 }
   0xe   : > { %p52_p4 = scmp.eq.s32.totalorder %s1959_s22, 0  ;;  %p369_p7 = scmp.eq.s32.totalorder %s1959_s22, 1 }
   0xf   : > { %s1975_s27 = scalar_select %p36_p1, %s1832_s20, %s38_s25  }
  0x10   : > { %p1977_p5 = por %p46_p2, %p45_p0  ;;  %p1981_p6 = por %p52_p4, %p51_p3 }
  0x11   : > { %2306 = sst [smem:[#allocation12_spill]] %s1975_s27  ;;  %p375_p8 = scmp.eq.s32.totalorder %s1481_s23, 1 }
  0x12   : > { %s2308_s29 = scalar_select %p1981_p6, 1, 0 }
  0x13   : > { %p1654_p10 = scmp.lt.s32.totalorder %s1836_s21, 2  ;;  %p1988_p11 = por %p369_p7, %p45_p0 }
  0x14   : > { %p1992_p12 = por %p375_p8, %p51_p3  ;;  %s437_s17 = sand.u32 1, %s1832_s20  }
  0x15   : > { %s2309_s30 = scalar_select %p1988_p11, 1, 0 }
  0x16   : > { %s2311_s16 = scalar_select %p1992_p12, 1, 0 }
  0x17   : > { %2310 = sst [smem:[#allocation13_spill]] %s2309_s30  ;;  %s1485_s25 = sshll.u32 %s1836_s21, 7 }
  0x18   : > { %2312 = sst [smem:[#allocation14_spill]] %s2311_s16  ;;  %s1484_s26 = sshll.u32 %s437_s17, 3 }
  0x19   : > { %s2001_s18 = scalar_lea.hbm %s2275_s0, %s1485_s25  ;;  %s441_s23 = scalar_lea.vmem [#allocation3], %s1484_s26 }
  0x1a   : > { %s448_s15 = sshll.u32 %s441_s23, 4  ;;  %p2005_p13 = pnand %p1654_p10, %p1977_p5  ;;  %s2009_s15 = int_to_ptr.vmem [resolvable:$true] %s448_s15 }
  0x1b   : > { %s438_s20 = scalar_lea.sflag [#allocation4], %s437_s17  ;;  %s1744_s16 = scalar_lea.hbm %s2001_s18, 128 }
  0x1c   : > { %p1745_p2 = scmp.ne.s32.totalorder %s2001_s18, %s1744_s16  ;;  %p1746_p3 = pneg %p2005_p13 }
  0x1d   : > { %s1749_s28 = scalar_lea.hbm %s2275_s0, 256  ;;  %p1750_p5 = scmp.lt.s32.totalorder %s2001_s18, %s2275_s0 }
  0x1e   : > { %p1747_p4 = pnand %p1746_p3, %p1745_p2  ;;  %p1751_p8 = scmp.lt.s32.totalorder %s1749_s28, %s1744_s16 }
  0x20   : > { %p1748_p7 = pneg %p1747_p4  ;;  %p1752_p10 = por %p1751_p8, %p1750_p5 }
  0x22   : > { %p1753_p9 = pnand %p1752_p10, %p1748_p7 }
  0x24   : > { %1756 = shalt.err (!%p1753_p9)
}
  0x25   : > { %s1757_s17 = scalar_lea.vmem %s2009_s15, 128  ;;  %s1838_s23 = smov [#allocation3]  }
  0x26   : > { %p1758_p0 = scmp.ne.s32.totalorder %s2009_s15, %s1757_s17  ;;  %s1762_s14 = sshll.u32 %s1838_s23, 4  ;;  %s1763_s14 = int_to_ptr.vmem [resolvable:$false] %s1762_s14 }
  0x27   : > { %s1764_s24 = scalar_lea.vmem %s1763_s14, 256  ;;  %p1765_p4 = scmp.lt.s32.totalorder %s2009_s15, %s1763_s14 }
  0x28   : > { %p1760_p1 = pnand %p1758_p0, %p1746_p3  ;;  %p1766_p12 = scmp.lt.s32.totalorder %s1764_s24, %s1757_s17 }
  0x2a   : > { %p1761_p2 = pneg %p1760_p1  ;;  %p1767_p11 = por %p1766_p12, %p1765_p4 }
  0x2c   : > { %p1768_p6 = pnand %p1767_p11, %p1761_p2 }
  0x2e   : > { %1771 = shalt.err (!%p1768_p6)
}
  0x2f   : > { %1649 = dma.hbm_to_vmem [thread:$0]  (!%p2005_p13), %s2001_s18, 128, %s2009_s15, %s438_s20  }
  0x30   : > { %p2314_p9 = scmp.lt.s32.totalorder %s1836_s21, 3  ;;  %p2315_p7 = scmp.ge.s32.totalorder %s1836_s21, 1 }
  0x32   : > { %p454_p0 = pnand %p2315_p7, %p2314_p9 }
  0x33   : > { %s2036_s16 = sand.u32 (!%p454_p0), 1, %s1828_s19   ;;  %p2316_p6 = scmp.ne.s32.totalorder (!%p454_p0), %s2308_s29, 0 }
  0x34   : > { %457 = sbr.rel (%p454_p0) target bundleno = 1751 (0x6d7), region = 80  ;;  %s1487_s14 = sshll.u32 (!%p454_p0), %s2036_s16, 3 }
  0x35   : > { %s460_s27 = scalar_lea.sflag (!%p454_p0), [#allocation4], %s2036_s16  ;;  %s463_s30 = scalar_lea.vmem (!%p454_p0), [#allocation3], %s1487_s14 }
  0x39   : > { %1815 = dma.done.wait (%p2316_p6), %s460_s27, 128  }
  0x3a   : > { %1817 = vsyncadd (%p2316_p6), %s460_s27, 4294967168  ;;  %vm516_vm0 = vcmask 261120   ;;  %v2046_v0 = vld [vmem:[%s463_s30] sm:$0xff]  ;;  %v1839_v10 = vmov 0   ;;  %v512_v12 = vld [vmem:[%s2276_s1] sm:$0xff]  ;;  %s1840_s27 = smov 96   ;;  %v552_v24 = vlaneseq }
  0x3b   : > { %v517_v1 = vsel %vm516_vm0, %v2046_v0, 0.0  ;;  %v1706_v7 = vld [vmem:[%s2282_s7 + $0x14] ss:$8 sps:$4 sm:$0xff]   ;;  %v1708_v8 = vld [vmem:[%s2282_s7 + $0x10] ss:$8 sps:$4 sm:$0xff]   ;;  %617 = vmatprep.mubr.bf16.mxu0 %v1839_v10  ;;  %628 = vrot.lane.b32.xlu1 %v512_v12, %s1840_s27  ;;  %v513_v13 = vld [vmem:[%s2277_s2] sm:$0xff] }
  0x3c   : > { %518 = vadd.xlane.f32.xlu0 %v517_v1  ;;  %v1709_v9 = vld [vmem:[%s2282_s7 + $0x4] ss:$8 sps:$4 sm:$0xff]   ;;  %597 = vmatprep.subr.bf16.mxu0 %v1706_v7  ;;  %v1711_v11 = vld [vmem:[%s2282_s7] ss:$8 sps:$4 sm:$0xff]   ;;  %s1841_s18 = smov 32   ;;  %v2083_v25 = vshrl.u32 %v552_v24, 7 }
  0x3d   : > { %598 = vmatpush1.bf16.msra.mxu0 %v1708_v8  ;;  %v1489_v18 = vld [vmem:[%s2278_s3] ss:$0 sm:$0xff]  ;;  %v1842_v40 = vmov 0.0   ;;  %vm1843_vm1 = vmmov 0   ;;  %s1844_s23 = smov 72   ;;  %s1845_s24 = smov 88  }
  0x3e   : > { %599 = vmatprep.subr.bf16.mxu0 %v1709_v9  ;;  %v1490_v20 = vld [vmem:[%s2279_s4] ss:$0 sm:$0xff]  ;;  %v554_v26 = vsub.s32 0, %v2083_v25  ;;  %v558_v28 = vsub.s32 1, %v2083_v25  ;;  %1570 = vmatprep.subr.bf16.mxu1 %v1842_v40  ;;  %s1846_s30 = smov 120   ;;  %s1847_s15 = smov 80  }
  0x3f   : > { %638 = vrot.lane.b32.xlu1 %v513_v13, %s1841_s18  ;;  %v550_v27 = vld [vmem:[%s2283_s8] sm:$0x3]  ;;  %1572 = vmatprep.mubr.msk.bf16.mxu1 %vm1843_vm1, %v1842_v40  ;;  %s1849_s20 = smov 104   ;;  %s1850_s29 = smov 64   ;;  %vm659_vm2 = vcmask 64512   ;;  %vm723_vm3 = vcmask 1043456  }
  0x40   : > { %v555_v29 = vrot.slane %v550_v27, %v554_v26  ;;  %v559_v30 = vrot.slane %v550_v27, %v558_v28  ;;  %v651_v1 = vand.u32 127, %v552_v24  ;;  %s1852_s28 = smov 40   ;;  %s1853_s25 = smov 56   ;;  %vm886_vm5 = vcmask 130112  }
  0x41   : > { %600 = vmatpush1.bf16.msra.mxu0 %v1711_v11  ;;  %s1855_s17 = smov 16   ;;  %vm1003_vm6 = vcmask 195712   ;;  %vm1120_vm7 = vcmask 261312  }
  0x42   : > { %1558 = vmatprep.subr.bf16.mxu0 %v1842_v40  ;;  %vm652_vm4 = vcmp.ge.s32.totalorder %v2083_v25, %v651_v1 }
  0xad   : > { %v629_v33 = vpop.permute.xlu1 %628 }
  0xb1   : > { %v639_v41 = vpop.permute.xlu1 %638 }
  0xc5   : > { %v519_v2 = vpop.xlane.xlu0 %518 }
  0xc6   : > { %v521_v3 = vmul.f32 0.03125, %v519_v2 }
  0xc8   : > { %v522_v4 = vsub.f32 %v2046_v0, %v521_v3 }
  0xca   : > { %v523_v5 = vmul.f32 %v522_v4, %v522_v4 }
  0xcc   : > { %v524_v6 = vsel %vm516_vm0, %v523_v5, 0.0 }
  0xcd   : > { %525 = vadd.xlane.f32.xlu0 %v524_v6 }
 0x156   : > { %v526_v14 = vpop.xlane.xlu0 %525 }
 0x157   : > { %v527_v15 = vmul.f32 0.03125, %v526_v14 }
 0x159   : > { %v528_v16 = vadd.f32 1e-05, %v527_v15 }
 0x15b   : > { %1724 = vrsqrt.f32 %v528_v16 }
 0x168   : > { %v1725_v17 = vpop.eup %1724 }
 0x169   : > { %v2075_v19 = vmul.f32 %v1725_v17, %v522_v4 }
 0x16b   : > { %v537_v21 = vmul.f32 %v1489_v18, %v2075_v19 }
 0x16d   : > { %v544_v22 = vadd.f32 %v1490_v20, %v537_v21 }
 0x16f   : > { %v545_v23 = vpack.c.bf16 %v544_v22, %v544_v22 }
 0x171   : > { %1495 = vmatmul.mubr.msk.bf16.vlgmr.msra.gmra.mxu0 %vm516_vm0, %v545_v23 }
 0x172   : > { %1560 = vmatprep.mubr.msk.bf16.mxu0 %vm1843_vm1, %v1842_v40 }
 0x231   : > { %v619_v31 = vpop.f32.mrf.mxu0 }
 0x232   : > { %v620_v32 = vadd.f32 %v619_v31, %v555_v29 }
 0x233   : > { %v621_v34 = vpop.f32.mrf.mxu0 }
 0x234   : > { %v622_v35 = vadd.f32 %v621_v34, %v559_v30  ;;  %v631_v36 = vmul.f32 %v629_v33, %v620_v32  ;;  %v641_v42 = vmul.f32 %v639_v41, %v620_v32  ;;  %v626_v47 = vmul.f32 %v620_v32, %v513_v13 }
 0x235   : > { %v623_v37 = vpop.f32.mrf.mxu0  ;;  %v2099_v50 = vpack.c.bf16 %v620_v32, %v620_v32 }
 0x236   : > { %v642_v38 = vmul.f32 %v622_v35, %v512_v12  ;;  %633 = vrot.lane.b32.xlu1 %v631_v36, %s1841_s18 }
 0x237   : > { %v624_v39 = vpop.f32.mrf.mxu0 }
 0x238   : > { %644 = vrot.lane.b32.xlu0 %v642_v38, %s1841_s18  ;;  %s1848_s18 = smov 112  }
 0x2a8   : > { %v634_v46 = vpop.permute.xlu1 %633 }
 0x2a9   : > { %v636_v48 = vadd.f32 %v634_v46, %v626_v47 }
 0x2aa   : > { %v645_v43 = vpop.permute.xlu0 %644 }
 0x2ab   : > { %v647_v44 = vadd.f32 %v645_v43, %v641_v42  ;;  %v653_v49 = vpack.c.bf16 %v636_v48, %v636_v48 }
 0x2ad   : > { %v654_v45 = vpack.c.bf16 %v647_v44, %v647_v44 }
 0x2af   : > { %1007 = vrot.lane.b32.xlu0 %v654_v45, %s1844_s23  ;;  %657 = vrot.lane.b32.xlu1 %v654_v45, %s1840_s27  ;;  %s1851_s27 = smov 48   ;;  %s1856_s23 = smov 24  }
 0x2b3   : > { %773 = vrot.lane.b32.xlu1 %v654_v45, %s1845_s24  ;;  %s1524_s24 = sshll.u32 %s1959_s22, 7  ;;  %s1857_s22 = smov [#allocation6]  }
 0x2b7   : > { %771 = vrot.lane.b32.xlu1 %v653_v49, %s1846_s30  ;;  %s509_s30 = scalar_lea.vmem [#allocation6], %s1487_s14  ;;  %s1776_s14 = sshll.u32 %s1857_s22, 4  ;;  %s1777_s14 = int_to_ptr.vmem [resolvable:$false] %s1776_s14 }
 0x2b8   : > { %s1778_s26 = scalar_lea.vmem %s1777_s14, 256 }
 0x2bb   : > { %890 = vrot.lane.b32.xlu1 %v654_v45, %s1847_s15  ;;  %s1411_s15 = sshll.u32 %s509_s30, 4  ;;  %s1412_s15 = int_to_ptr.vmem [resolvable:$true] %s1411_s15 }
 0x2bc   : > { %p1779_p3 = scmp.lt.s32.totalorder %s1412_s15, %s1777_s14 }
 0x2bf   : > { %888 = vrot.lane.b32.xlu1 %v653_v49, %s1848_s18 }
 0x2c3   : > { %1005 = vrot.lane.b32.xlu1 %v653_v49, %s1849_s20 }
 0x2c7   : > { %718 = vrot.lane.b32.xlu1 %v2099_v50, %s1850_s29  ;;  %s1854_s29 = smov 8  }
 0x321   : > { %v658_v51 = vpop.permute.xlu1 %657  ;;  %v1008_v59 = vpop.permute.xlu0 %1007 }
 0x322   : > { %v664_v52 = vsel %vm659_vm2, %v658_v51, 0  ;;  %v1013_v61 = vsel %vm659_vm2, %v1008_v59, 0 }
 0x323   : > { %1559 = vmatpush3.bf16.xpose.msra.mxu0 %v664_v52 }
 0x324   : > { %1564 = vmatprep.subr.bf16.mxu0 %v1842_v40 }
 0x325   : > { %v774_v53 = vpop.permute.xlu1 %773 }
 0x326   : > { %v779_v54 = vsel %vm659_vm2, %v774_v53, 0 }
 0x327   : > { %1571 = vmatpush3.bf16.xpose.msra.mxu1 %v779_v54 }
 0x328   : > { %1582 = vmatprep.subr.bf16.mxu1 %v1842_v40 }
 0x329   : > { %v772_v55 = vpop.permute.xlu1 %771 }
 0x32a   : > { %1561 = vmatmul.mubr.msk.bf16.vlgmr.msra.gmra.mxu0 %vm659_vm2, %v653_v49 }
 0x32b   : > { %1566 = vmatprep.mubr.msk.bf16.mxu0 %vm1843_vm1, %v1842_v40 }
 0x32d   : > { %v891_v56 = vpop.permute.xlu1 %890 }
 0x32e   : > { %v896_v57 = vsel %vm659_vm2, %v891_v56, 0  ;;  %1573 = vmatmul.mubr.msk.bf16.vlgmr.msra.gmra.mxu1 %vm659_vm2, %v772_v55  ;;  %v1508_v56 = vld [vmem:[%s2280_s5] ss:$0 sm:$0xff] }
 0x32f   : > { %1583 = vmatpush3.bf16.xpose.msra.mxu1 %v896_v57  ;;  %1584 = vmatprep.mubr.msk.bf16.mxu1 %vm1843_vm1, %v1842_v40  ;;  %v1712_v57 = vld [vmem:[%s2286_s11 + $0x8] sm:$0xff]  }
 0x330   : > { %1594 = vmatprep.subr.bf16.mxu1 %v1842_v40 }
 0x331   : > { %v889_v58 = vpop.permute.xlu1 %888 }
 0x335   : > { %v1006_v60 = vpop.permute.xlu1 %1005 }
 0x336   : > { %1585 = vmatmul.mubr.msk.bf16.vlgmr.msra.gmra.mxu1 %vm659_vm2, %v889_v58  ;;  %v1198_v58 = vmul.f32 %v1508_v56, %v2075_v19  ;;  %v1722_v56 = vld [vmem:[%s2288_s13 + $0x8] sm:$0xff]  }
 0x337   : > { %1595 = vmatpush3.bf16.xpose.msra.mxu1 %v1013_v61  ;;  %1596 = vmatprep.mubr.msk.bf16.mxu1 %vm1843_vm1, %v1842_v40  ;;  %v1509_v61 = vld [vmem:[%s2281_s6] ss:$0 sm:$0xff] }
 0x338   : > { %1606 = vmatprep.subr.bf16.mxu1 %v1842_v40  ;;  %v1205_v19 = vadd.f32 %v1509_v61, %v1198_v58 }
 0x339   : > { %v719_v62 = vpop.permute.xlu1 %718 }
 0x33a   : > { %v725_v63 = vsel %vm723_vm3, %v719_v62, 0  ;;  %v1713_v62 = vld [vmem:[%s2286_s11] sm:$0xff]  }
 0x33b   : > { %1565 = vmatpush3.bf16.msra.mxu0 %v725_v63  ;;  %v1206_v63 = vpack.c.bf16 %v1205_v19, %v1205_v19 }
 0x33c   : > { %1576 = vmatprep.subr.bf16.mxu0 %v1842_v40 }
 0x33e   : > { %1597 = vmatmul.mubr.msk.bf16.vlgmr.msra.gmra.mxu1 %vm659_vm2, %v1006_v60 }
 0x33f   : > { %1610 = vmatprep.mubr.msk.bf16.mxu1 %vm1843_vm1, %v1842_v40 }
 0x3ea   : > { %v700_v2 = vpop.f32.mrf.mxu0 }
 0x3eb   : > { %v706_v3 = vsel %vm652_vm4, %v700_v2, -1e+30 }
 0x3ec   : > { %v1562_v4 = vpop.f32.mrf.mxu0  ;;  %v707_v5 = vsel %vm659_vm2, %v706_v3, -inf }
 0x3ed   : > { %708 = vmax.xlane.f32.xlu0 %v707_v5 }
 0x3ee   : > { %v703_v6 = vpop.f32.mrf.mxu0  ;;  %v815_v7 = vpop.f32.mrf.mxu1 }
 0x3ef   : > { %v821_v8 = vsel %vm652_vm4, %v815_v7, -1e+30 }
 0x3f0   : > { %v1563_v9 = vpop.f32.mrf.mxu0  ;;  %v1574_v10 = vpop.f32.mrf.mxu1  ;;  %v822_v11 = vsel %vm659_vm2, %v821_v8, -inf }
 0x3f1   : > { %823 = vmax.xlane.f32.xlu1 %v822_v11 }
 0x3f2   : > { %v818_v12 = vpop.f32.mrf.mxu1 }
 0x3f4   : > { %v1575_v13 = vpop.f32.mrf.mxu1 }
 0x3f6   : > { %v932_v14 = vpop.f32.mrf.mxu1 }
 0x3f7   : > { %v938_v15 = vsel %vm652_vm4, %v932_v14, -1e+30 }
 0x3f8   : > { %v1586_v16 = vpop.f32.mrf.mxu1  ;;  %v939_v17 = vsel %vm659_vm2, %v938_v15, -inf }
 0x3f9   : > { %940 = vmax.xlane.f32.xlu0 %v939_v17  ;;  %v1714_v17 = vld [vmem:[%s2284_s9 + $0x8] sm:$0xff]  }
 0x3fa   : > { %v935_v18 = vpop.f32.mrf.mxu1  ;;  %1607 = vmatpush3.bf16.msra.mxu1 %v1714_v17 }
 0x3fb   : > { %1608 = vmatprep.subr.bf16.mxu1 %v1842_v40 }
 0x3fc   : > { %v1587_v20 = vpop.f32.mrf.mxu1 }
 0x3fe   : > { %v1049_v21 = vpop.f32.mrf.mxu1 }
 0x3ff   : > { %v1055_v22 = vsel %vm652_vm4, %v1049_v21, -1e+30  ;;  %v1715_v21 = vld [vmem:[%s2284_s9] sm:$0xff]  }
 0x400   : > { %v1598_v23 = vpop.f32.mrf.mxu1  ;;  %v1056_v24 = vsel %vm659_vm2, %v1055_v22, -inf  ;;  %1609 = vmatpush3.bf16.msra.mxu1 %v1715_v21 }
 0x401   : > { %1057 = vmax.xlane.f32.xlu0 %v1056_v24  ;;  %1622 = vmatprep.subr.bf16.mxu1 %v1842_v40 }
 0x402   : > { %949 = vrot.lane.b32.xlu1 %v2099_v50, %s1851_s27  ;;  %v1052_v26 = vpop.f32.mrf.mxu1 }
 0x404   : > { %v1599_v27 = vpop.f32.mrf.mxu1 }
 0x406   : > { %1066 = vrot.lane.b32.xlu1 %v2099_v50, %s1852_s28  ;;  %s1398_s28 = scalar_lea.sflag [#allocation5], %s2036_s16 }
 0x417   : > { %832 = vrot.lane.b32.xlu0 %v2099_v50, %s1853_s25  ;;  %s1772_s25 = scalar_lea.vmem %s1412_s15, 128 }
 0x418   : > { %p1773_p11 = scmp.ne.s32.totalorder %s1412_s15, %s1772_s25  ;;  %p1780_p5 = scmp.lt.s32.totalorder %s1778_s26, %s1772_s25 }
 0x41a   : > { %p1781_p8 = por %p1780_p5, %p1779_p3 }
 0x476   : > { %v709_v28 = vpop.xlane.xlu0 %708 }
 0x477   : > { %v710_v29 = vsub.f32 %v706_v3, %v709_v28 }
 0x479   : > { %v711_v30 = vmul.f32 1.442695, %v710_v29 }
 0x47a   : > { %v824_v25 = vpop.xlane.xlu1 %823 }
 0x47b   : > { %1726 = vpow2.f32 %v711_v30  ;;  %v825_v31 = vsub.f32 %v821_v8, %v824_v25 }
 0x47d   : > { %v826_v32 = vmul.f32 1.442695, %v825_v31 }
 0x47e   : > { %v950_v46 = vpop.permute.xlu1 %949 }
 0x47f   : > { %1728 = vpow2.f32 %v826_v32  ;;  %v955_v48 = vsel %vm723_vm3, %v950_v46, 0  ;;  %v1716_v46 = vld [vmem:[%s2288_s13 + $0x38] sm:$0xff]  }
 0x482   : > { %v941_v33 = vpop.xlane.xlu0 %940  ;;  %v1067_v51 = vpop.permute.xlu1 %1066 }
 0x483   : > { %v942_v34 = vsub.f32 %v938_v15, %v941_v33  ;;  %v1072_v53 = vsel %vm723_vm3, %v1067_v51, 0  ;;  %v1718_v51 = vld [vmem:[%s2288_s13 + $0x28] sm:$0xff]  }
 0x485   : > { %v943_v35 = vmul.f32 1.442695, %v942_v34 }
 0x487   : > { %1730 = vpow2.f32 %v943_v35 }
 0x488   : > { %v1727_v36 = vpop.eup %1726 }
 0x489   : > { %v716_v37 = vpack.c.bf16 %v1727_v36, %v1727_v36  ;;  %v713_v59 = vsel %vm659_vm2, %v1727_v36, 0.0 }
 0x48a   : > { %v1058_v38 = vpop.xlane.xlu0 %1057 }
 0x48b   : > { %v1059_v39 = vsub.f32 %v1055_v22, %v1058_v38  ;;  %1567 = vmatmul.mubr.msk.bf16.vlgmr.msra.gmra.mxu0 %vm659_vm2, %v716_v37  ;;  %v1510_v37 = vld [vmem:[%s2287_s12] ss:$0 sm:$0xff] }
 0x48c   : > { %v1729_v41 = vpop.eup %1728  ;;  %1578 = vmatprep.mubr.msk.bf16.mxu0 %vm1843_vm1, %v1842_v40 }
 0x48d   : > { %v1060_v42 = vmul.f32 1.442695, %v1059_v39  ;;  %v828_v43 = vsel %vm659_vm2, %v1729_v41, 0.0  ;;  %v831_v47 = vpack.c.bf16 %v1729_v41, %v1729_v41 }
 0x48e   : > { %829 = vadd.xlane.f32.xlu0 %v828_v43  ;;  %v833_v44 = vpop.permute.xlu0 %832 }
 0x48f   : > { %1732 = vpow2.f32 %v1060_v42  ;;  %v838_v45 = vsel %vm723_vm3, %v833_v44, 0 }
 0x490   : > { %1577 = vmatpush3.bf16.msra.mxu0 %v838_v45 }
 0x491   : > { %1588 = vmatprep.subr.bf16.mxu0 %v1842_v40 }
 0x493   : > { %1579 = vmatmul.mubr.msk.bf16.vlgmr.msra.gmra.mxu0 %vm659_vm2, %v831_v47 }
 0x494   : > { %v1731_v49 = vpop.eup %1730  ;;  %1589 = vmatpush3.bf16.msra.mxu0 %v955_v48  ;;  %1590 = vmatprep.mubr.msk.bf16.mxu0 %vm1843_vm1, %v1842_v40 }
 0x495   : > { %v945_v50 = vsel %vm659_vm2, %v1731_v49, 0.0  ;;  %1600 = vmatprep.subr.bf16.mxu0 %v1842_v40  ;;  %v948_v52 = vpack.c.bf16 %v1731_v49, %v1731_v49  ;;  %v1717_v49 = vld [vmem:[%s2288_s13 + $0x30] sm:$0xff]  }
 0x496   : > { %946 = vadd.xlane.f32.xlu1 %v945_v50 }
 0x49b   : > { %1591 = vmatmul.mubr.msk.bf16.vlgmr.msra.gmra.mxu0 %vm659_vm2, %v948_v52  ;;  %v1719_v52 = vld [vmem:[%s2288_s13 + $0x20] sm:$0xff]  }
 0x49c   : > { %v1733_v54 = vpop.eup %1732  ;;  %1601 = vmatpush3.bf16.msra.mxu0 %v1072_v53  ;;  %1602 = vmatprep.mubr.msk.bf16.mxu0 %vm1843_vm1, %v1842_v40  ;;  %v1720_v53 = vld [vmem:[%s2288_s13 + $0x18] sm:$0xff]  }
 0x49d   : > { %v1062_v55 = vsel %vm659_vm2, %v1733_v54, 0.0  ;;  %1614 = vmatprep.subr.bf16.mxu0 %v1842_v40  ;;  %v1065_v60 = vpack.c.bf16 %v1733_v54, %v1733_v54  ;;  %v1721_v54 = vld [vmem:[%s2288_s13 + $0x10] sm:$0xff]  }
 0x49e   : > { %1063 = vadd.xlane.f32.xlu0 %v1062_v55 }
 0x4a2   : > { %714 = vadd.xlane.f32.xlu0 %v713_v59  ;;  %v1723_v59 = vld [vmem:[%s2288_s13] sm:$0xff]  }
 0x4a3   : > { %1603 = vmatmul.mubr.msk.bf16.vlgmr.msra.gmra.mxu0 %vm659_vm2, %v1065_v60 }
 0x4a4   : > { %1615 = vmatpush3.bf16.msra.mxu0 %v1712_v57  ;;  %1618 = vmatprep.mubr.msk.bf16.mxu0 %vm1843_vm1, %v1842_v40 }
 0x4a5   : > { %1616 = vmatprep.subr.bf16.mxu0 %v1842_v40 }
 0x4a8   : > { %1617 = vmatpush3.bf16.msra.mxu0 %v1713_v62 }
 0x4ab   : > { %1619 = vmatmul.mubr.msk.bf16.vlgmr.msra.gmra.mxu0 %vm516_vm0, %v1206_v63 }
 0x517   : > { %v830_v1 = vpop.xlane.xlu0 %829 }
 0x51f   : > { %v947_v5 = vpop.xlane.xlu1 %946 }
 0x527   : > { %v1064_v2 = vpop.xlane.xlu0 %1063 }
 0x52b   : > { %v715_v3 = vpop.xlane.xlu0 %714 }
 0x52c   : > { %1734 = vrcp.f32 %v715_v3 }
 0x52d   : > { %1736 = vrcp.f32 %v830_v1 }
 0x52e   : > { %1738 = vrcp.f32 %v947_v5 }
 0x52f   : > { %1740 = vrcp.f32 %v1064_v2  ;;  %v1504_v2 = vld [vmem:[%s2285_s10] ss:$0 sm:$0xff] }
 0x539   : > { %v1735_v4 = vpop.eup %1734 }
 0x53a   : > { %v1737_v11 = vpop.eup %1736 }
 0x53b   : > { %v1739_v18 = vpop.eup %1738 }
 0x53c   : > { %v1741_v27 = vpop.eup %1740 }
 0x54b   : > { %v761_v6 = vpop.f32.mrf.mxu0 }
 0x54c   : > { %v768_v7 = vmul.f32 %v1735_v4, %v761_v6 }
 0x54d   : > { %v1568_v8 = vpop.f32.mrf.mxu0 }
 0x54e   : > { %769 = vst.msk [vmem:[#allocation2] sm:$0xff] %vm659_vm2, %v768_v7 }
 0x54f   : > { %v764_v9 = vpop.f32.mrf.mxu0 }
 0x551   : > { %v1569_v10 = vpop.f32.mrf.mxu0 }
 0x553   : > { %v874_v12 = vpop.f32.mrf.mxu0 }
 0x554   : > { %v881_v13 = vmul.f32 %v1737_v11, %v874_v12 }
 0x555   : > { %v1580_v14 = vpop.f32.mrf.mxu0 }
 0x556   : > { %883 = vrot.lane.b32.xlu1 %v881_v13, %s1854_s29  ;;  %s2319_s29 = sld [smem:[#allocation16_spill]] }
 0x557   : > { %v877_v15 = vpop.f32.mrf.mxu0 }
 0x559   : > { %v1581_v16 = vpop.f32.mrf.mxu0 }
 0x55b   : > { %v991_v20 = vpop.f32.mrf.mxu0 }
 0x55c   : > { %v998_v22 = vmul.f32 %v1739_v18, %v991_v20  ;;  %s2237_s27 = scalar_lea.hbm %s2319_s29, %s1524_s24 }
 0x55d   : > { %v1592_v23 = vpop.f32.mrf.mxu0 }
 0x55e   : > { %1000 = vrot.lane.b32.xlu0 %v998_v22, %s1855_s17  ;;  %s2317_s17 = sld [smem:[#allocation15_spill]] }
 0x55f   : > { %v994_v24 = vpop.f32.mrf.mxu0 }
 0x561   : > { %v1593_v26 = vpop.f32.mrf.mxu0 }
 0x563   : > { %v1108_v28 = vpop.f32.mrf.mxu0 }
 0x564   : > { %v1115_v29 = vmul.f32 %v1741_v27, %v1108_v28  ;;  %v1514_v3 = vld [vmem:[%s2317_s17] ss:$0 sm:$0xff] }
 0x565   : > { %v1604_v30 = vpop.f32.mrf.mxu0 }
 0x566   : > { %1117 = vrot.lane.b32.xlu1 %v1115_v29, %s1856_s23  ;;  %s2318_s23 = sld [smem:[#allocation13_spill]] }
 0x567   : > { %v1111_v25 = vpop.f32.mrf.mxu0 }
 0x569   : > { %v1605_v31 = vpop.f32.mrf.mxu0 }
 0x56b   : > { %v1267_v32 = vpop.f32.mrf.mxu0 }
 0x56c   : > { %v1268_v39 = vadd.f32 %v1510_v37, %v1267_v32  ;;  %p2320_p12 = scmp.ne.s32.totalorder %s2318_s23, 0 }
 0x56d   : > { %v1620_v33 = vpop.f32.mrf.mxu0 }
 0x56e   : > { %v1274_v41 = vmul.f32 0.044715, %v1268_v39  ;;  %v1273_v58 = vmul.f32 0.5, %v1268_v39  ;;  %p1774_p13 = pnand %p1773_p11, %p2320_p12 }
 0x56f   : > { %v1270_v34 = vpop.f32.mrf.mxu0 }
 0x570   : > { %v1275_v43 = vmul.f32 %v1274_v41, %v1268_v39  ;;  %p1775_p1 = pneg %p1774_p13 }
 0x571   : > { %v1621_v35 = vpop.f32.mrf.mxu0 }
 0x572   : > { %v1276_v44 = vmul.f32 %v1275_v43, %v1268_v39  ;;  %p1782_p10 = pnand %p1781_p8, %p1775_p1 }
 0x574   : > { %v1277_v47 = vadd.f32 %v1276_v44, %v1268_v39 }
 0x576   : > { %v1278_v50 = vmul.f32 0.7978846, %v1277_v47 }
 0x578   : > { %1742 = vtanh.f32 %v1278_v50 }
 0x585   : > { %v1743_v55 = vpop.eup %1742 }
 0x586   : > { %v1280_v57 = vadd.f32 1.0, %v1743_v55 }
 0x588   : > { %v1281_v60 = vmul.f32 %v1280_v57, %v1273_v58 }
 0x58a   : > { %v1282_v61 = vpack.c.bf16 %v1281_v60, %v1281_v60 }
 0x5c8   : > { %v884_v36 = vpop.permute.xlu1 %883 }
 0x5c9   : > { %887 = vst.msk [vmem:[#allocation2] sm:$0xff] %vm886_vm5, %v884_v36 }
 0x5d0   : > { %v1001_v38 = vpop.permute.xlu0 %1000 }
 0x5d1   : > { %1004 = vst.msk [vmem:[#allocation2] sm:$0xff] %vm1003_vm6, %v1001_v38 }
 0x5d8   : > { %v1118_v42 = vpop.permute.xlu1 %1117 }
 0x5d9   : > { %1121 = vst.msk [vmem:[#allocation2] sm:$0xff] %vm1120_vm7, %v1118_v42 }
 0x5e0   : > { %v1122_v45 = vld [vmem:[#allocation2] sm:$0xff] }
 0x5e1   : > { %v1123_v48 = vpack.c.bf16 %v1122_v45, %v1122_v45 }
 0x5e3   : > { %1611 = vmatmul.mubr.msk.bf16.vlgmr.msra.gmra.mxu1 %vm516_vm0, %v1123_v48 }
 0x5e4   : > { %1623 = vmatpush3.bf16.msra.mxu1 %v1716_v46  ;;  %1638 = vmatprep.mubr.msk.bf16.mxu1 %vm1843_vm1, %v1842_v40 }
 0x5e5   : > { %1624 = vmatprep.subr.bf16.mxu1 %v1842_v40 }
 0x5e8   : > { %1625 = vmatpush3.bf16.msra.mxu1 %v1717_v49 }
 0x5e9   : > { %1626 = vmatprep.subr.bf16.mxu1 %v1842_v40 }
 0x5ec   : > { %1627 = vmatpush3.bf16.msra.mxu1 %v1718_v51 }
 0x5ed   : > { %1628 = vmatprep.subr.bf16.mxu1 %v1842_v40 }
 0x5f0   : > { %1629 = vmatpush3.bf16.msra.mxu1 %v1719_v52 }
 0x5f1   : > { %1630 = vmatprep.subr.bf16.mxu1 %v1842_v40 }
 0x5f4   : > { %1631 = vmatpush3.bf16.msra.mxu1 %v1720_v53 }
 0x5f5   : > { %1632 = vmatprep.subr.bf16.mxu1 %v1842_v40 }
 0x5f8   : > { %1633 = vmatpush3.bf16.msra.mxu1 %v1721_v54 }
 0x5f9   : > { %1634 = vmatprep.subr.bf16.mxu1 %v1842_v40 }
 0x5fc   : > { %1635 = vmatpush3.bf16.msra.mxu1 %v1722_v56 }
 0x5fd   : > { %1636 = vmatprep.subr.bf16.mxu1 %v1842_v40 }
 0x600   : > { %1637 = vmatpush3.bf16.msra.mxu1 %v1723_v59 }
 0x603   : > { %1639 = vmatmul.mubr.bf16.vlgmr.msra.gmra.mxu1 %v1282_v61 }
 0x6a3   : > { %v1184_v62 = vpop.f32.mrf.mxu1 }
 0x6a4   : > { %v1185_v40 = vadd.f32 %v1504_v2, %v1184_v62 }
 0x6a5   : > { %v1612_v19 = vpop.f32.mrf.mxu1 }
 0x6a7   : > { %v1187_v63 = vpop.f32.mrf.mxu1 }
 0x6a9   : > { %v1613_v1 = vpop.f32.mrf.mxu1 }
 0x6c3   : > { %v1388_v4 = vpop.f32.mrf.mxu1 }
 0x6c4   : > { %v1389_v5 = vadd.f32 %v1514_v3, %v1388_v4 }
 0x6c5   : > { %v1640_v6 = vpop.f32.mrf.mxu1 }
 0x6c6   : > { %v1394_v7 = vadd.f32 %v1389_v5, %v1185_v40 }
 0x6c7   : > { %v1391_v8 = vpop.f32.mrf.mxu1 }
 0x6c8   : > { %v1395_v9 = vadd.f32 %v1394_v7, %v2046_v0 }
 0x6c9   : > { %v1641_v10 = vpop.f32.mrf.mxu1 }
 0x6ca   : > { %1396 = vst.msk [vmem:[%s509_s30] sm:$0xff] %vm516_vm0, %v1395_v9 }
 0x6cb   : > { %1785 = shalt.err (!%p1782_p10)
}
 0x6cc   : > { %s1786_s17 = scalar_lea.hbm %s2237_s27, 128  ;;  %s1790_s30 = scalar_lea.hbm %s2319_s29, 256 }
 0x6cd   : > { %p1787_p2 = scmp.ne.s32.totalorder %s2237_s27, %s1786_s17  ;;  %p1791_p7 = scmp.lt.s32.totalorder %s2237_s27, %s2319_s29 }
 0x6ce   : > { %p1792_p0 = scmp.lt.s32.totalorder %s1790_s30, %s1786_s17 }
 0x6cf   : > { %p1788_p4 = pnand %p1787_p2, %p2320_p12 }
 0x6d0   : > { %p1793_p6 = por %p1792_p0, %p1791_p7 }
 0x6d1   : > { %p1789_p9 = pneg %p1788_p4 }
 0x6d3   : > { %p1794_p11 = pnand %p1793_p6, %p1789_p9 }
 0x6d5   : > { %1797 = shalt.err (!%p1794_p11)
}
 0x6d6   : > { %1644 = dma.vmem_to_hbm [thread:$0]  (%p2320_p12), %s1412_s15, 128, %s2237_s27, %s1398_s28  }
 0x6d7 PF: > { %s2321_s25 = sld [smem:[#allocation9_spill]]  ;;  %p2324_p1 = scmp.ge.s32.totalorder %s1836_s21, 2 }
 0x6d8   : > { %s2322_s22 = sld [smem:[#allocation14_spill]] }
 0x6dd   : > { %s1423_s14 = sand.u32 1, %s2321_s25  }
 0x6de   : > { %p2323_p13 = scmp.ne.s32.totalorder %s2322_s22, 0  ;;  %s1424_s26 = scalar_lea.sflag [#allocation5], %s1423_s14 }
 0x6e0   : > { %p1651_p3 = pnand %p2324_p1, %p2323_p13 }
 0x6e2   : > { %p1652_p5 = pneg %p1651_p3 }
 0x6e4   : > { %1819 = dma.done.wait (%p1652_p5), %s1424_s26, 128  }
 0x6e5   : > { %1821 = vsyncadd (%p1652_p5), %s1424_s26, 4294967168  ;;  %s2325_s21 = sld [smem:[#allocation11_spill]]  ;;  %s2328_s18 = smov %s1828_s19 }
 0x6e6   : > { %s2326_s17 = sld [smem:[#allocation10_spill]] }
 0x6e7   : > { %s2327_s20 = sld [smem:[#allocation12_spill]] }
 0x6eb   : > { %p28_p8 = scmp.ge.s32.totalorder %s2325_s21, 4  }
 0x6ec   : > { %s2329_s19 = smov %s2326_s17 }
 0x6ed   :  { %30 = sbr.rel (!%p28_p8) target bundleno = 8 (0x8), region = 125 }
 0x6f2   :  { %1429 = vsyncpa [#allocation4], 1 }
 0x6f3   :  { %1431 = vsyncpa [#allocation4 + $0x1], 1 }
 0x6f4   :  { %1432 = vsyncpa [#allocation5], 1 }
 0x6f5   :  { %1434 = vsyncpa [#allocation5 + $0x1], 1 }

</bundles_post_ra>
